<compile_context>
chip_gen: v7x
topology: tpu7x:2x2x1
jax: 0.10.0
libtpu: 0.0.40
codegen_flags: <defaults>
</compile_context>

<pallas_src>
import jax
import jax.numpy as jnp
from jax.experimental import pallas as pl
from jax.experimental.pallas import tpu as pltpu


# --------------------------------------------------------------------------
# Kernel 1: 3x3 "same" conv + bias for one image (single big matmul), plus
#           per-image per-channel sum / sum-of-squares for BatchNorm.
# --------------------------------------------------------------------------
def conv_stats_kernel(xp_ref, w_ref, b_ref, out_ref, sum_ref, sq_ref):
    _, c_in, hp, wp = xp_ref.shape          # padded image block (1, C_in, H+2, W+2)
    h, w = hp - 2, wp - 2
    hw = h * w

    # im2col: 9 shifted (C_in, H, W) windows, stacked along the untiled leading axis,
    # flattened once to (9*C_in, H*W).
    taps = [xp_ref[0, :, dy:dy + h, dx:dx + w] for dy in range(3) for dx in range(3)]
    slab = jnp.concatenate(taps, axis=0).reshape(9 * c_in, hw)
    slab = slab.astype(jnp.bfloat16)        # bf16 operands, f32 accumulation

    acc = jnp.dot(w_ref[...], slab, preferred_element_type=jnp.float32)  # (C_out, H*W)
    acc = acc + b_ref[...]                  # (C_out, 1) broadcast over lanes

    out_ref[0] = acc                                        # lane-dense store
    sum_ref[0] = jnp.sum(acc, axis=1, keepdims=True)        # per-image partial stats
    sq_ref[0] = jnp.sum(acc * acc, axis=1, keepdims=True)


# --------------------------------------------------------------------------
# Kernel 2: folded BatchNorm (per-channel affine) + ReLU, lane-dense blocks.
# --------------------------------------------------------------------------
def bn_relu_kernel(y_ref, scale_ref, shift_ref, out_ref):
    y = y_ref[0]                            # (C_out, H*W)
    out_ref[0] = jnp.maximum(y * scale_ref[...] + shift_ref[...], 0.0)


# --------------------------------------------------------------------------
# Wrappers
# --------------------------------------------------------------------------
def conv3x3_with_stats(x_nchw, w2_bf16, b_col):
    n, c_in, h, w = x_nchw.shape
    c_out = w2_bf16.shape[0]
    hw = h * w
    # TODO(synk): fold the 1-px halo padding into the kernel (masked edge taps / halo DMA)
    # to remove this input-sized HBM pass, and add an H-row-tile grid axis with halo for
    # large images so the per-step working set stays within v7x's 64 MiB VMEM.
    xp = jnp.pad(x_nchw, ((0, 0), (0, 0), (1, 1), (1, 1)))
    return pl.pallas_call(
        conv_stats_kernel,
        out_shape=(jax.ShapeDtypeStruct((n, c_out, hw), jnp.float32),
                   jax.ShapeDtypeStruct((n, c_out, 1), jnp.float32),
                   jax.ShapeDtypeStruct((n, c_out, 1), jnp.float32)),
        grid_spec=pltpu.PrefetchScalarGridSpec(
            num_scalar_prefetch=0,
            grid=(n,),
            in_specs=[
                pl.BlockSpec((1, c_in, h + 2, w + 2), lambda i: (i, 0, 0, 0)),
                pl.BlockSpec((c_out, 9 * c_in), lambda i: (0, 0)),
                pl.BlockSpec((c_out, 1), lambda i: (0, 0)),
            ],
            out_specs=(
                pl.BlockSpec((1, c_out, hw), lambda i: (i, 0, 0)),
                pl.BlockSpec((1, c_out, 1), lambda i: (i, 0, 0)),
                pl.BlockSpec((1, c_out, 1), lambda i: (i, 0, 0)),
            ),
        ),
        compiler_params=pltpu.CompilerParams(
            dimension_semantics=("parallel",),          # per-batch outputs -> megacore-safe
            vmem_limit_bytes=48 * 1024 * 1024),
    )(xp, w2_bf16, b_col)


def bn_relu(y_flat, scale_col, shift_col):
    n, c_out, hw = y_flat.shape
    return pl.pallas_call(
        bn_relu_kernel,
        out_shape=jax.ShapeDtypeStruct((n, c_out, hw), jnp.float32),
        grid_spec=pltpu.PrefetchScalarGridSpec(
            num_scalar_prefetch=0,
            grid=(n,),
            in_specs=[
                pl.BlockSpec((1, c_out, hw), lambda i: (i, 0, 0)),
                pl.BlockSpec((c_out, 1), lambda i: (0, 0)),
                pl.BlockSpec((c_out, 1), lambda i: (0, 0)),
            ],
            out_specs=pl.BlockSpec((1, c_out, hw), lambda i: (i, 0, 0)),
        ),
        compiler_params=pltpu.CompilerParams(
            dimension_semantics=("parallel",),
            vmem_limit_bytes=48 * 1024 * 1024),
        input_output_aliases={0: 0},        # conv_out is dead after BN; reuse its buffer
    )(y_flat, scale_col, shift_col)


def unit_forward(x_nchw, w_oihw, bias, gamma, beta, eps=1e-5):
    """Forward pass of Unit in training mode (BatchNorm uses batch statistics)."""
    n, c_in, h, w = x_nchw.shape
    c_out = w_oihw.shape[0]
    x_nchw = x_nchw.astype(jnp.float32)

    # OIHW -> (C_out, ky, kx, C_in) -> (C_out, 9*C_in); bf16 for the MXU.
    w2 = jnp.transpose(w_oihw, (0, 2, 3, 1)).reshape(c_out, 9 * c_in).astype(jnp.bfloat16)
    b_col = bias.reshape(c_out, 1).astype(jnp.float32)

    conv_out, sums, sqs = conv3x3_with_stats(x_nchw, w2, b_col)

    # Glue: reduce per-batch partial stats, fold into per-channel scale/shift.
    count = float(n * h * w)
    mean = jnp.sum(sums[:, :, 0], axis=0) / count
    ex2 = jnp.sum(sqs[:, :, 0], axis=0) / count
    var = jnp.maximum(ex2 - mean * mean, 0.0)        # biased variance, clamped >= 0
    scale = gamma.astype(jnp.float32) / jnp.sqrt(var + eps)
    shift = beta.astype(jnp.float32) - mean * scale

    out_flat = bn_relu(conv_out, scale.reshape(c_out, 1), shift.reshape(c_out, 1))
    return out_flat.reshape(n, c_out, h, w)          # free reshape: memory is already NCHW


# --------------------------------------------------------------------------
# Pure-JAX reference for verification
# --------------------------------------------------------------------------
def unit_reference(x_nchw, w_oihw, bias, gamma, beta, eps=1e-5):
    x_nhwc = jnp.transpose(x_nchw, (0, 2, 3, 1))
    w_hwio = jnp.transpose(w_oihw, (2, 3, 1, 0))
    y = jax.lax.conv_general_dilated(
        x_nhwc, w_hwio, window_strides=(1, 1), padding=((1, 1), (1, 1)),
        dimension_numbers=("NHWC", "HWIO", "NHWC"))
    y = y + bias.reshape(1, 1, 1, -1)
    mean = jnp.mean(y, axis=(0, 1, 2))
    var = jnp.mean((y - mean) ** 2, axis=(0, 1, 2))
    y = (y - mean) / jnp.sqrt(var + eps) * gamma + beta
    y = jnp.maximum(y, 0.0)
    return jnp.transpose(y, (0, 3, 1, 2))


if __name__ == "__main__":
    key = jax.random.PRNGKey(0)
    k_x, k_w, k_b = jax.random.split(key, 3)

    N, C_in, C_out, H, W = 2, 4, 8, 16, 16
    x = jax.random.normal(k_x, (N, C_in, H, W), dtype=jnp.float32)

    # Deterministic parameters (PyTorch OIHW layout for the conv weight).
    w = 0.1 * jax.random.normal(k_w, (C_out, C_in, 3, 3), dtype=jnp.float32)
    b = 0.05 * jax.random.normal(k_b, (C_out,), dtype=jnp.float32)
    gamma = jnp.ones((C_out,), jnp.float32)    # BatchNorm weight init
    beta = jnp.zeros((C_out,), jnp.float32)    # BatchNorm bias init

    unit_fwd = jax.jit(unit_forward)
    out = jax.block_until_ready(unit_fwd(x, w, b, gamma, beta))

    ref = unit_reference(x, w, b, gamma, beta)
    assert out.shape == (N, C_out, H, W)
    # bf16 MXU operands with f32 accumulation -> compare at bf16-level tolerance.
    assert jnp.allclose(out, ref, atol=3e-2, rtol=3e-2), (
        f"mismatch vs reference, max abs diff {jnp.max(jnp.abs(out - ref))}")

    print("KERNEL_OK")
</pallas_src>

<mosaic_0001>
module attributes {stable_mosaic.version = 11 : i64} {
  func.func @conv_stats_kernel(%arg0: i32, %arg1: memref<1x4x18x18xf32, #tpu.memory_space<vmem>>, %arg2: memref<8x36xbf16, #tpu.memory_space<vmem>>, %arg3: memref<8x1xf32, #tpu.memory_space<vmem>>, %arg4: memref<1x8x256xf32, #tpu.memory_space<vmem>>, %arg5: memref<1x8x1xf32, #tpu.memory_space<vmem>>, %arg6: memref<1x8x1xf32, #tpu.memory_space<vmem>>) attributes {dimension_semantics = [#tpu.dimension_semantics<parallel>], iteration_bounds = array<i64: 2>, scalar_prefetch = 0 : i64, scratch_operands = 0 : i64, tpu.core_type = #tpu.core_type<tc>, window_params = [{transform_indices = @transform_0, window_bounds = array<i64: 1, 4, 18, 18>}, {pipeline_mode = #tpu.pipeline_mode<synchronous>, transform_indices = @transform_1, window_bounds = array<i64: 8, 36>}, {pipeline_mode = #tpu.pipeline_mode<synchronous>, transform_indices = @transform_2, window_bounds = array<i64: 8, 1>}, {transform_indices = @transform_3, window_bounds = array<i64: 1, 8, 256>}, {transform_indices = @transform_4, window_bounds = array<i64: 1, 8, 1>}, {transform_indices = @transform_5, window_bounds = array<i64: 1, 8, 1>}]} {
    %c0 = arith.constant 0 : index
    %c0_0 = arith.constant 0 : index
    %c0_1 = arith.constant 0 : index
    %c0_2 = arith.constant 0 : index
    %0 = vector.load %arg1[%c0, %c0_0, %c0_1, %c0_2] : memref<1x4x18x18xf32, #tpu.memory_space<vmem>>, vector<1x4x16x16xf32>
    %1 = vector.shape_cast %0 : vector<1x4x16x16xf32> to vector<4x16x16xf32>
    %c0_3 = arith.constant 0 : index
    %c0_4 = arith.constant 0 : index
    %c0_5 = arith.constant 0 : index
    %c1 = arith.constant 1 : index
    %2 = vector.load %arg1[%c0_3, %c0_4, %c0_5, %c1] : memref<1x4x18x18xf32, #tpu.memory_space<vmem>>, vector<1x4x16x16xf32>
    %3 = vector.shape_cast %2 : vector<1x4x16x16xf32> to vector<4x16x16xf32>
    %c0_6 = arith.constant 0 : index
    %c0_7 = arith.constant 0 : index
    %c0_8 = arith.constant 0 : index
    %c2 = arith.constant 2 : index
    %4 = vector.load %arg1[%c0_6, %c0_7, %c0_8, %c2] : memref<1x4x18x18xf32, #tpu.memory_space<vmem>>, vector<1x4x16x16xf32>
    %5 = vector.shape_cast %4 : vector<1x4x16x16xf32> to vector<4x16x16xf32>
    %c0_9 = arith.constant 0 : index
    %c0_10 = arith.constant 0 : index
    %c1_11 = arith.constant 1 : index
    %c0_12 = arith.constant 0 : index
    %6 = vector.load %arg1[%c0_9, %c0_10, %c1_11, %c0_12] : memref<1x4x18x18xf32, #tpu.memory_space<vmem>>, vector<1x4x16x16xf32>
    %7 = vector.shape_cast %6 : vector<1x4x16x16xf32> to vector<4x16x16xf32>
    %c0_13 = arith.constant 0 : index
    %c0_14 = arith.constant 0 : index
    %c1_15 = arith.constant 1 : index
    %c1_16 = arith.constant 1 : index
    %8 = vector.load %arg1[%c0_13, %c0_14, %c1_15, %c1_16] : memref<1x4x18x18xf32, #tpu.memory_space<vmem>>, vector<1x4x16x16xf32>
    %9 = vector.shape_cast %8 : vector<1x4x16x16xf32> to vector<4x16x16xf32>
    %c0_17 = arith.constant 0 : index
    %c0_18 = arith.constant 0 : index
    %c1_19 = arith.constant 1 : index
    %c2_20 = arith.constant 2 : index
    %10 = vector.load %arg1[%c0_17, %c0_18, %c1_19, %c2_20] : memref<1x4x18x18xf32, #tpu.memory_space<vmem>>, vector<1x4x16x16xf32>
    %11 = vector.shape_cast %10 : vector<1x4x16x16xf32> to vector<4x16x16xf32>
    %c0_21 = arith.constant 0 : index
    %c0_22 = arith.constant 0 : index
    %c2_23 = arith.constant 2 : index
    %c0_24 = arith.constant 0 : index
    %12 = vector.load %arg1[%c0_21, %c0_22, %c2_23, %c0_24] : memref<1x4x18x18xf32, #tpu.memory_space<vmem>>, vector<1x4x16x16xf32>
    %13 = vector.shape_cast %12 : vector<1x4x16x16xf32> to vector<4x16x16xf32>
    %c0_25 = arith.constant 0 : index
    %c0_26 = arith.constant 0 : index
    %c2_27 = arith.constant 2 : index
    %c1_28 = arith.constant 1 : index
    %14 = vector.load %arg1[%c0_25, %c0_26, %c2_27, %c1_28] : memref<1x4x18x18xf32, #tpu.memory_space<vmem>>, vector<1x4x16x16xf32>
    %15 = vector.shape_cast %14 : vector<1x4x16x16xf32> to vector<4x16x16xf32>
    %c0_29 = arith.constant 0 : index
    %c0_30 = arith.constant 0 : index
    %c2_31 = arith.constant 2 : index
    %c2_32 = arith.constant 2 : index
    %16 = vector.load %arg1[%c0_29, %c0_30, %c2_31, %c2_32] : memref<1x4x18x18xf32, #tpu.memory_space<vmem>>, vector<1x4x16x16xf32>
    %17 = vector.shape_cast %16 : vector<1x4x16x16xf32> to vector<4x16x16xf32>
    %18 = tpu.concatenate %1, %3, %5, %7, %9, %11, %13, %15, %17 in 0 : vector<4x16x16xf32>, vector<4x16x16xf32>, vector<4x16x16xf32>, vector<4x16x16xf32>, vector<4x16x16xf32>, vector<4x16x16xf32>, vector<4x16x16xf32>, vector<4x16x16xf32>, vector<4x16x16xf32> -> vector<36x16x16xf32>
    %19 = vector.shape_cast %18 : vector<36x16x16xf32> to vector<36x256xf32>
    %20 = arith.truncf %19 : vector<36x256xf32> to vector<36x256xbf16>
    %c0_33 = arith.constant 0 : index
    %c0_34 = arith.constant 0 : index
    %21 = vector.load %arg2[%c0_33, %c0_34] : memref<8x36xbf16, #tpu.memory_space<vmem>>, vector<8x36xbf16>
    %cst = arith.constant dense<0.000000e+00> : vector<8x256xf32>
    %22 = tpu.matmul %21, %20, %cst {dimension_numbers = #tpu.dot_dimension_numbers<[1], [0], [0], [1], [0, 0, 1, 1], [], []>} : vector<8x36xbf16>, vector<36x256xbf16>, vector<8x256xf32> -> vector<8x256xf32>
    %c0_35 = arith.constant 0 : index
    %c0_36 = arith.constant 0 : index
    %23 = vector.load %arg3[%c0_35, %c0_36] : memref<8x1xf32, #tpu.memory_space<vmem>>, vector<8x1xf32>
    %24 = vector.broadcast %23 : vector<8x1xf32> to vector<8x256xf32>
    %25 = arith.addf %22, %24 : vector<8x256xf32>
    %c0_37 = arith.constant 0 : index
    %c0_38 = arith.constant 0 : index
    %c0_39 = arith.constant 0 : index
    %26 = vector.load %arg4[%c0_37, %c0_38, %c0_39] : memref<1x8x256xf32, #tpu.memory_space<vmem>>, vector<1x8x256xf32>
    %27 = vector.shape_cast %26 : vector<1x8x256xf32> to vector<8x256xf32>
    %28 = vector.shape_cast %25 : vector<8x256xf32> to vector<1x8x256xf32>
    tpu.vector_store %arg4[%c0_37, %c0_38, %c0_39], %28 {strides = array<i32>} : memref<1x8x256xf32, #tpu.memory_space<vmem>>, vector<1x8x256xf32>,
    %cst_40 = arith.constant dense<0.000000e+00> : vector<8xf32>
    %29 = vector.multi_reduction <add>, %25, %cst_40 [1] : vector<8x256xf32> to vector<8xf32>
    %30 = vector.shape_cast %29 : vector<8xf32> to vector<8x1xf32>
    %c0_41 = arith.constant 0 : index
    %c0_42 = arith.constant 0 : index
    %c0_43 = arith.constant 0 : index
    %31 = vector.load %arg5[%c0_41, %c0_42, %c0_43] : memref<1x8x1xf32, #tpu.memory_space<vmem>>, vector<1x8x1xf32>
    %32 = vector.shape_cast %31 : vector<1x8x1xf32> to vector<8x1xf32>
    %33 = vector.shape_cast %30 : vector<8x1xf32> to vector<1x8x1xf32>
    tpu.vector_store %arg5[%c0_41, %c0_42, %c0_43], %33 {strides = array<i32>} : memref<1x8x1xf32, #tpu.memory_space<vmem>>, vector<1x8x1xf32>,
    %34 = arith.mulf %25, %25 : vector<8x256xf32>
    %cst_44 = arith.constant dense<0.000000e+00> : vector<8xf32>
    %35 = vector.multi_reduction <add>, %34, %cst_44 [1] : vector<8x256xf32> to vector<8xf32>
    %36 = vector.shape_cast %35 : vector<8xf32> to vector<8x1xf32>
    %c0_45 = arith.constant 0 : index
    %c0_46 = arith.constant 0 : index
    %c0_47 = arith.constant 0 : index
    %37 = vector.load %arg6[%c0_45, %c0_46, %c0_47] : memref<1x8x1xf32, #tpu.memory_space<vmem>>, vector<1x8x1xf32>
    %38 = vector.shape_cast %37 : vector<1x8x1xf32> to vector<8x1xf32>
    %39 = vector.shape_cast %36 : vector<8x1xf32> to vector<1x8x1xf32>
    tpu.vector_store %arg6[%c0_45, %c0_46, %c0_47], %39 {strides = array<i32>} : memref<1x8x1xf32, #tpu.memory_space<vmem>>, vector<1x8x1xf32>,
    return
  }
  func.func @transform_0(%arg0: i32) -> (i32, i32, i32, i32) {
    %c0_i32 = arith.constant 0 : i32
    %c0_i32_0 = arith.constant 0 : i32
    %c0_i32_1 = arith.constant 0 : i32
    %c0_i32_2 = arith.constant 0 : i32
    return %arg0, %c0_i32, %c0_i32_0, %c0_i32_1 : i32, i32, i32, i32
  }
  func.func @transform_1(%arg0: i32) -> (i32, i32) {
    %c0_i32 = arith.constant 0 : i32
    %c0_i32_0 = arith.constant 0 : i32
    %c0_i32_1 = arith.constant 0 : i32
    return %c0_i32, %c0_i32_0 : i32, i32
  }
  func.func @transform_2(%arg0: i32) -> (i32, i32) {
    %c0_i32 = arith.constant 0 : i32
    %c0_i32_0 = arith.constant 0 : i32
    %c0_i32_1 = arith.constant 0 : i32
    return %c0_i32, %c0_i32_0 : i32, i32
  }
  func.func @transform_3(%arg0: i32) -> (i32, i32, i32) {
    %c0_i32 = arith.constant 0 : i32
    %c0_i32_0 = arith.constant 0 : i32
    %c0_i32_1 = arith.constant 0 : i32
    return %arg0, %c0_i32, %c0_i32_0 : i32, i32, i32
  }
  func.func @transform_4(%arg0: i32) -> (i32, i32, i32) {
    %c0_i32 = arith.constant 0 : i32
    %c0_i32_0 = arith.constant 0 : i32
    %c0_i32_1 = arith.constant 0 : i32
    return %arg0, %c0_i32, %c0_i32_0 : i32, i32, i32
  }
  func.func @transform_5(%arg0: i32) -> (i32, i32, i32) {
    %c0_i32 = arith.constant 0 : i32
    %c0_i32_0 = arith.constant 0 : i32
    %c0_i32_1 = arith.constant 0 : i32
    return %arg0, %c0_i32, %c0_i32_0 : i32, i32, i32
  }
}

module attributes {stable_mosaic.version = 11 : i64} {
  func.func @bn_relu_kernel(%arg0: i32, %arg1: memref<1x8x256xf32, #tpu.memory_space<vmem>>, %arg2: memref<8x1xf32, #tpu.memory_space<vmem>>, %arg3: memref<8x1xf32, #tpu.memory_space<vmem>>, %arg4: memref<1x8x256xf32, #tpu.memory_space<vmem>>) attributes {dimension_semantics = [#tpu.dimension_semantics<parallel>], iteration_bounds = array<i64: 2>, scalar_prefetch = 0 : i64, scratch_operands = 0 : i64, tpu.core_type = #tpu.core_type<tc>, window_params = [{transform_indices = @transform_0, window_bounds = array<i64: 1, 8, 256>}, {pipeline_mode = #tpu.pipeline_mode<synchronous>, transform_indices = @transform_1, window_bounds = array<i64: 8, 1>}, {pipeline_mode = #tpu.pipeline_mode<synchronous>, transform_indices = @transform_2, window_bounds = array<i64: 8, 1>}, {transform_indices = @transform_3, window_bounds = array<i64: 1, 8, 256>}]} {
    %c0 = arith.constant 0 : index
    %c0_0 = arith.constant 0 : index
    %c0_1 = arith.constant 0 : index
    %0 = vector.load %arg1[%c0, %c0_0, %c0_1] : memref<1x8x256xf32, #tpu.memory_space<vmem>>, vector<1x8x256xf32>
    %1 = vector.shape_cast %0 : vector<1x8x256xf32> to vector<8x256xf32>
    %c0_2 = arith.constant 0 : index
    %c0_3 = arith.constant 0 : index
    %2 = vector.load %arg2[%c0_2, %c0_3] : memref<8x1xf32, #tpu.memory_space<vmem>>, vector<8x1xf32>
    %3 = vector.broadcast %2 : vector<8x1xf32> to vector<8x256xf32>
    %4 = arith.mulf %1, %3 : vector<8x256xf32>
    %c0_4 = arith.constant 0 : index
    %c0_5 = arith.constant 0 : index
    %5 = vector.load %arg3[%c0_4, %c0_5] : memref<8x1xf32, #tpu.memory_space<vmem>>, vector<8x1xf32>
    %6 = vector.broadcast %5 : vector<8x1xf32> to vector<8x256xf32>
    %7 = arith.addf %4, %6 : vector<8x256xf32>
    %cst = arith.constant 0.000000e+00 : f32
    %8 = vector.broadcast %cst : f32 to vector<8x256xf32>
    %9 = arith.maximumf %7, %8 : vector<8x256xf32>
    %c0_6 = arith.constant 0 : index
    %c0_7 = arith.constant 0 : index
    %c0_8 = arith.constant 0 : index
    %10 = vector.load %arg4[%c0_6, %c0_7, %c0_8] : memref<1x8x256xf32, #tpu.memory_space<vmem>>, vector<1x8x256xf32>
    %11 = vector.shape_cast %10 : vector<1x8x256xf32> to vector<8x256xf32>
    %12 = vector.shape_cast %9 : vector<8x256xf32> to vector<1x8x256xf32>
    tpu.vector_store %arg4[%c0_6, %c0_7, %c0_8], %12 {strides = array<i32>} : memref<1x8x256xf32, #tpu.memory_space<vmem>>, vector<1x8x256xf32>,
    return
  }
  func.func @transform_0(%arg0: i32) -> (i32, i32, i32) {
    %c0_i32 = arith.constant 0 : i32
    %c0_i32_0 = arith.constant 0 : i32
    %c0_i32_1 = arith.constant 0 : i32
    return %arg0, %c0_i32, %c0_i32_0 : i32, i32, i32
  }
  func.func @transform_1(%arg0: i32) -> (i32, i32) {
    %c0_i32 = arith.constant 0 : i32
    %c0_i32_0 = arith.constant 0 : i32
    %c0_i32_1 = arith.constant 0 : i32
    return %c0_i32, %c0_i32_0 : i32, i32
  }
  func.func @transform_2(%arg0: i32) -> (i32, i32) {
    %c0_i32 = arith.constant 0 : i32
    %c0_i32_0 = arith.constant 0 : i32
    %c0_i32_1 = arith.constant 0 : i32
    return %c0_i32, %c0_i32_0 : i32, i32
  }
  func.func @transform_3(%arg0: i32) -> (i32, i32, i32) {
    %c0_i32 = arith.constant 0 : i32
    %c0_i32_0 = arith.constant 0 : i32
    %c0_i32_1 = arith.constant 0 : i32
    return %arg0, %c0_i32, %c0_i32_0 : i32, i32, i32
  }
}

</mosaic_0001>

<bundles_post_ra>
// kernel: unit_forward.3
= control target key start
LH: loop header
LB: loop body
LE: loop exit
PB: predicated region body
PF: predicated region fallthrough
CT: control target
= control target key end

     0   :  { %s300_s12 = smov 0   ;;  %s323_s0 = inlined_call_operand.vmem [shape: f32[2,8,256], index: 0, kind: input, shape index: {}, may-alias: {0,3}]   ;;  %s324_s1 = inlined_call_operand.vmem [shape: f32[8,1], index: 1, kind: input, shape index: {}]   ;;  %s325_s2 = inlined_call_operand.vmem [shape: f32[8,1], index: 2, kind: input, shape index: {}]   ;;  %s326_s3 = inlined_call_operand.vmem [shape: f32[2,8,256], index: 3, kind: output, shape index: {}, may-alias: {0,3}]  }
   0x1 LB: > { %s248_s13 = sadd.s32 4294967295, %s277_s12   ;;  %p252_p0 = scmp.ge.s32.totalorder %s277_s12, 1  ;;  %s277_s12 = sphi %s300_s12, %s13_s12  }
   0x2   : > { %p137_p1 = scmp.lt.s32.totalorder %s277_s12, 3 }
   0x4   : > { %p138_p2 = pnand %p252_p0, %p137_p1 }
   0x5   : > { %v173_v0 = vld [vmem:[%s324_s1] sm:$0xff] (!%p138_p2)  ;;  %v279_v1 = vmov (!%p138_p2), 0   ;;  %p161_p3 = scmp.lt.s32.totalorder (!%p138_p2), %s248_s13, 1 }
   0x6   : > { %141 = sbr.rel (%p138_p2) target bundleno = 144 (0x90), region = 32  ;;  %270 = vset.pattern.permute.xlu0 (!%p138_p2), %v279_v1  ;;  %v181_v2 = vld [vmem:[%s325_s2] sm:$0xff] (!%p138_p2) }
   0x7   : > { %176 = vperm.xlu0 (!%p138_p2), %270, %v173_v0  }
   0xb   : > { %184 = vperm.xlu0 (!%p138_p2), %270, %v181_v2  }
   0xd   : > { %s328_s13 = smov (!%p161_p3, %s248_s13), 1 }
   0xe   : > { %s259_s18 = sshll.u32 %s328_s13, 4 }
   0xf   : > { %s165_s21 = scalar_lea.vmem %s323_s0, %s259_s18  ;;  %s170_s24 = scalar_lea.vmem %s326_s3, %s259_s18 }
  0x10   : > { %v171_v4 = vld [vmem:[%s165_s21] sm:$0xff]  ;;  %v172_v5 = vld [vmem:[%s165_s21 + $0x8] sm:$0xff] }
  0x86   : > { %v177_v3 = vpop.permute.xlu0 %176 }
  0x87   : > { %v179_v6 = vmul.f32 %v177_v3, %v171_v4  ;;  %v180_v7 = vmul.f32 %v177_v3, %v172_v5 }
  0x8a   : > { %v185_v8 = vpop.permute.xlu0 %184 }
  0x8b   : > { %v187_v9 = vadd.f32 %v185_v8, %v179_v6  ;;  %v188_v10 = vadd.f32 %v185_v8, %v180_v7 }
  0x8d   : > { %v189_v11 = vmax.f32 %v187_v9, 0.0  ;;  %v190_v12 = vmax.f32 %v188_v10, 0.0 }
  0x8f   : > { %191 = vst [vmem:[%s170_s24] sm:$0xff] %v189_v11  ;;  %192 = vst [vmem:[%s170_s24 + $0x8] sm:$0xff] %v190_v12 }
  0x90 PF: > { %s13_s12 = sadd.s32 1, %s277_s12  }
  0x91   : > { %p10_p4 = scmp.ge.s32.totalorder %s13_s12, 4  }
  0x93   :  { %12 = sbr.rel (!%p10_p4) target bundleno = 1 (0x1), region = 62 }

// kernel: unit_forward.2
= control target key start
LH: loop header
LB: loop body
LE: loop exit
PB: predicated region body
PF: predicated region fallthrough
CT: control target
= control target key end

     0   :  { %s2504_s18 = smov 0   ;;  %s3483_s0 = inlined_call_operand.vmem [shape: f32[2,4,18,18], index: 0, kind: input, shape index: {}]   ;;  %s3484_s1 = inlined_call_operand.vmem [shape: bf16[8,36], index: 1, kind: input, shape index: {}]   ;;  %s3485_s2 = inlined_call_operand.vmem [shape: f32[8,1], index: 2, kind: input, shape index: {}]   ;;  %s3486_s3 = inlined_call_operand.vmem [shape: f32[2,8,256], index: 3, kind: output, shape index: {0}]   ;;  %s3487_s4 = inlined_call_operand.vmem [shape: f32[2,8,1], index: 4, kind: output, shape index: {1}]   ;;  %s3488_s5 = inlined_call_operand.vmem [shape: f32[2,8,1], index: 5, kind: output, shape index: {2}]  }
   0x1 LB: > { %s2215_s19 = sadd.s32 4294967295, %s2459_s18   ;;  %p2219_p0 = scmp.ge.s32.totalorder %s2459_s18, 1  ;;  %s2459_s18 = sphi %s2504_s18, %s16_s18  }
   0x2   : > { %p192_p1 = scmp.lt.s32.totalorder %s2459_s18, 3 }
   0x4   : > { %p193_p2 = pnand %p2219_p0, %p192_p1 }
   0x6   : > { %196 = sbr.rel (%p193_p2) target bundleno = 757 (0x2f5), region = 32 }
   0xd   : > { %p228_p3 = scmp.lt.s32.totalorder %s2215_s19, 1  ;;  %v2461_v0 = vmov 1983009808   ;;  %v444_v2 = vlaneseq  ;;  %s2462_s24 = smov 127   ;;  %vm1943_vm0 = vcmask 130048   ;;  %vm1949_vm1 = vcmask 261120  }
   0xe   : > { %v442_v1 = vunpack.c.l.s4 %v2461_v0  ;;  %s2463_s25 = smov 126   ;;  %s2465_s26 = smov 16   ;;  %vm1955_vm2 = vcmask 392192   ;;  %vm1961_vm3 = vcmask 523264   ;;  %vm1967_vm4 = vcmask 654336  }
   0xf   : > { %s3526_s19 = smov (!%p228_p3, %s2215_s19), 1  ;;  %v2532_v14 = vshrl.u32 %v444_v2, 7  ;;  %s2466_s27 = smov 32   ;;  %vm1973_vm5 = vcmask 785408   ;;  %vm1979_vm6 = vcmask 916480   ;;  %vm2037_vm7 = vcmask 1041408  }
  0x10   : > { %s2230_s20 = smul.u32 96, %s3526_s19  ;;  %v443_v13 = vunpack.c.0.s8 %v442_v1  ;;  %s2467_s28 = smov 48   ;;  %vm2033_vm8 = vcmask 293888   ;;  %vm2090_vm9 = vcmask 7168  }
  0x11   : > { %s2468_s29 = smov 64   ;;  %s2469_s30 = smov 80  }
  0x12   : > { %s2518_s23 = scalar_lea.vmem %s3483_s0, %s2230_s20  ;;  %v2569_v28 = vsub.s32 %v443_v13, %v2532_v14  ;;  %s2470_s6 = smov 96  }
  0x13   : > { %v252_v3 = vld [vmem:[%s2518_s23 + $0x38] sm:$0xff]  ;;  %v248_v4 = vld [vmem:[%s2518_s23 + $0x8] sm:$0xff]  ;;  %v254_v7 = vld [vmem:[%s2518_s23 + $0x50] sm:$0xff]  ;;  %s2471_s7 = smov 112   ;;  %s2229_s12 = sshll.u32 %s3526_s19, 4 }
  0x14   : > { %289 = vrot.lane.b32.xlu1 %v252_v3, %s2462_s24  ;;  %281 = vrot.lane.b32.xlu0 %v248_v4, %s2462_s24  ;;  %v1051_v5 = vcombine.low %v248_v4, %v252_v3  ;;  %v1052_v6 = vcombine.high %v248_v4, %v252_v3  ;;  %v250_v8 = vld [vmem:[%s2518_s23 + $0x20] sm:$0xff]  ;;  %v2527_v11 = vld [vmem:[%s2518_s23 + $0x18] sm:$0xff]  ;;  %s237_s15 = scalar_lea.vmem %s3486_s3, %s2229_s12  ;;  %s2223_s16 = sshll.u32 %s3526_s19, 3 }
  0x15   : > { %v1067_v9 = vcombine.low %v250_v8, %v254_v7  ;;  %v1068_v10 = vcombine.high %v250_v8, %v254_v7  ;;  %v2530_v12 = vld [vmem:[%s2518_s23 + $0x48] sm:$0xff]  ;;  %v2535_v15 = vld [vmem:[%s2518_s23] sm:$0xff]  ;;  %v2542_v18 = vld [vmem:[%s2518_s23 + $0x30] sm:$0xff]  ;;  %s241_s21 = scalar_lea.vmem %s3487_s4, %s2223_s16 }
  0x16   : > { %v455_v16 = vcombine.low %v2527_v11, %v2530_v12  ;;  %v456_v17 = vcombine.high %v2527_v11, %v2530_v12  ;;  %v439_v19 = vcombine.low %v2535_v15, %v2542_v18  ;;  %v440_v20 = vcombine.high %v2535_v15, %v2542_v18  ;;  %v2549_v21 = vld [vmem:[%s2518_s23 + $0x21] sm:$0xff]  ;;  %v2552_v22 = vld [vmem:[%s2518_s23 + $0x51] sm:$0xff]  ;;  %v2557_v23 = vld [vmem:[%s2518_s23 + $0x9] sm:$0xff] }
  0x17   : > { %v1235_v24 = vcombine.low %v2549_v21, %v2552_v22  ;;  %v2562_v25 = vld [vmem:[%s2518_s23 + $0x39] sm:$0xff]  ;;  %v1236_v26 = vcombine.high %v2549_v21, %v2552_v22  ;;  %v2574_v30 = vrot.slane %v1051_v5, %v2569_v28  ;;  %v2577_v31 = vrot.slane %v1052_v6, %v2569_v28  ;;  %v2585_v33 = vld [vmem:[%s2518_s23 + $0x49] sm:$0xff]  ;;  %v2594_v36 = vld [vmem:[%s2518_s23 + $0x1] sm:$0xff] }
  0x18   : > { %293 = vrot.lane.b32.xlu1 %v254_v7, %s2462_s24  ;;  %285 = vrot.lane.b32.xlu0 %v250_v8, %s2462_s24  ;;  %v1219_v27 = vcombine.low %v2557_v23, %v2562_v25  ;;  %v1220_v29 = vcombine.high %v2557_v23, %v2562_v25  ;;  %v2582_v32 = vld [vmem:[%s2518_s23 + $0x19] sm:$0xff]  ;;  %v2588_v34 = vrot.slane %v1067_v9, %v2569_v28  ;;  %v2601_v39 = vld [vmem:[%s2518_s23 + $0x31] sm:$0xff] }
  0x19   : > { %v2591_v35 = vrot.slane %v1068_v10, %v2569_v28  ;;  %v623_v37 = vcombine.low %v2582_v32, %v2585_v33  ;;  %v624_v38 = vcombine.high %v2582_v32, %v2585_v33  ;;  %v2604_v40 = vrot.slane %v1235_v24, %v2569_v28  ;;  %v2710_v6 = vld [vmem:[%s2518_s23 + $0x22] sm:$0xff]  ;;  %v2723_v9 = vld [vmem:[%s2518_s23 + $0x3a] sm:$0xff]  ;;  %v2759_v13 = vld [vmem:[%s2518_s23 + $0x32] sm:$0xff] }
  0x1a   : > { %v2607_v41 = vrot.slane %v1219_v27, %v2569_v28  ;;  %v607_v42 = vcombine.low %v2594_v36, %v2601_v39  ;;  %v608_v43 = vcombine.high %v2594_v36, %v2601_v39  ;;  %v2614_v44 = vrot.slane %v455_v16, %v2569_v28  ;;  %v2746_v10 = vld [vmem:[%s2518_s23 + $0x1a] sm:$0xff] }
  0x1b   : > { %v2617_v45 = vrot.slane %v439_v19, %v2569_v28  ;;  %v2620_v46 = vrot.slane %v1236_v26, %v2569_v28  ;;  %v2623_v47 = vrot.slane %v1220_v29, %v2569_v28  ;;  %v2628_v48 = vrot.slane %v456_v17, %v2569_v28 }
  0x1c   : > { %309 = vrot.lane.b32.xlu1 %v250_v8, %s2463_s25  ;;  %305 = vrot.lane.b32.xlu0 %v248_v4, %s2463_s25  ;;  %v2631_v49 = vrot.slane %v440_v20, %v2569_v28  ;;  %v1115_v50 = vcombine.low %v2574_v30, %v2588_v34  ;;  %v1283_v51 = vcombine.low %v2607_v41, %v2604_v40  ;;  %v2720_v8 = vld [vmem:[%s2518_s23 + $0x52] sm:$0xff] }
  0x1d   : > { %v1116_v52 = vcombine.high %v2574_v30, %v2588_v34  ;;  %v1284_v53 = vcombine.high %v2607_v41, %v2604_v40  ;;  %v1131_v54 = vcombine.low %v2577_v31, %v2591_v35  ;;  %v1299_v55 = vcombine.low %v2623_v47, %v2620_v46 }
  0x1e   : > { %v503_v56 = vcombine.low %v2617_v45, %v2614_v44  ;;  %v504_v57 = vcombine.high %v2617_v45, %v2614_v44  ;;  %v2654_v58 = vrot.slane %v623_v37, %v2569_v28  ;;  %v2657_v59 = vrot.slane %v624_v38, %v2569_v28 }
  0x1f   : > { %v2660_v60 = vrot.slane %v607_v42, %v2569_v28  ;;  %v2663_v61 = vrot.slane %v608_v43, %v2569_v28  ;;  %v519_v62 = vcombine.low %v2631_v49, %v2628_v48  ;;  %v1132_v63 = vcombine.high %v2577_v31, %v2591_v35 }
  0x20   : > { %317 = vrot.lane.b32.xlu1 %v254_v7, %s2463_s25  ;;  %313 = vrot.lane.b32.xlu0 %v252_v3, %s2463_s25  ;;  %v1300_v0 = vcombine.high %v2623_v47, %v2620_v46  ;;  %v520_v1 = vcombine.high %v2631_v49, %v2628_v48  ;;  %v2713_v7 = vld [vmem:[%s2518_s23 + $0xa] sm:$0xff] }
  0x21   : > { %v671_v2 = vcombine.low %v2660_v60, %v2654_v58  ;;  %v672_v3 = vcombine.high %v2660_v60, %v2654_v58  ;;  %v3500_v48 = vcombine.low %v2663_v61, %v2657_v59 }
  0x24   : > { %283 = vrot.lane.b32.xlu1 %v2527_v11, %s2462_s24  ;;  %279 = vrot.lane.b32.xlu0 %v2535_v15, %s2462_s24 }
  0x28   : > { %291 = vrot.lane.b32.xlu1 %v2530_v12, %s2462_s24  ;;  %287 = vrot.lane.b32.xlu0 %v2542_v18, %s2462_s24 }
  0x2c   : > { %307 = vrot.lane.b32.xlu1 %v2527_v11, %s2463_s25  ;;  %303 = vrot.lane.b32.xlu0 %v2535_v15, %s2463_s25  ;;  %v2749_v11 = vld [vmem:[%s2518_s23 + $0x2] sm:$0xff]  ;;  %v2464_v15 = vmov 1934713408  }
  0x2d   : > { %v506_v16 = vunpack.c.l.s4 %v2464_v15 }
  0x2f   : > { %v507_v19 = vunpack.c.0.s8 %v506_v16 }
  0x30   : > { %315 = vrot.lane.b32.xlu1 %v2530_v12, %s2463_s25  ;;  %311 = vrot.lane.b32.xlu0 %v2542_v18, %s2463_s25  ;;  %v2756_v12 = vld [vmem:[%s2518_s23 + $0x4a] sm:$0xff] }
  0x31   : > { %v2782_v26 = vsub.s32 %v507_v19, %v2532_v14 }
  0x33   : > { %v2792_v42 = vrot.slane %v1115_v50, %v2782_v26  ;;  %v1139_v30 = vrot.slane %v1131_v54, %v2782_v26  ;;  %v1307_v34 = vrot.slane %v1299_v55, %v2782_v26  ;;  %v2832_v40 = vrot.slane %v503_v56, %v2782_v26 }
  0x34   : > { %341 = vrot.lane.b32.xlu1 %v2549_v21, %s2462_s24  ;;  %337 = vrot.lane.b32.xlu0 %v2557_v23, %s2462_s24  ;;  %v1146_v41 = vrot.slane %v1132_v63, %v2782_v26  ;;  %v527_v44 = vrot.slane %v519_v62, %v2782_v26  ;;  %v534_v45 = vrot.slane %v520_v1, %v2782_v26 }
  0x35   : > { %3498 = vst [vmem:[#allocation2_spill] sm:$0xff] %v2832_v40  ;;  %v686_v62 = vrot.slane %v672_v3, %v2782_v26  ;;  %v695_v49 = vrot.slane %v3500_v48, %v2782_v26  ;;  %v3501_v1 = vcombine.high %v2663_v61, %v2657_v59 }
  0x38   : > { %349 = vrot.lane.b32.xlu1 %v2552_v22, %s2462_s24  ;;  %345 = vrot.lane.b32.xlu0 %v2562_v25, %s2462_s24 }
  0x3c   : > { %365 = vrot.lane.b32.xlu1 %v2549_v21, %s2463_s25  ;;  %361 = vrot.lane.b32.xlu0 %v2557_v23, %s2463_s25 }
  0x40   : > { %373 = vrot.lane.b32.xlu1 %v2552_v22, %s2463_s25  ;;  %369 = vrot.lane.b32.xlu0 %v2562_v25, %s2463_s25 }
  0x44   : > { %397 = vrot.lane.b32.xlu1 %v2710_v6, %s2462_s24  ;;  %393 = vrot.lane.b32.xlu0 %v2713_v7, %s2462_s24 }
  0x48   : > { %405 = vrot.lane.b32.xlu1 %v2720_v8, %s2462_s24  ;;  %401 = vrot.lane.b32.xlu0 %v2723_v9, %s2462_s24 }
  0x4c   : > { %339 = vrot.lane.b32.xlu1 %v2582_v32, %s2462_s24  ;;  %335 = vrot.lane.b32.xlu0 %v2594_v36, %s2462_s24 }
  0x50   : > { %347 = vrot.lane.b32.xlu1 %v2585_v33, %s2462_s24  ;;  %343 = vrot.lane.b32.xlu0 %v2601_v39, %s2462_s24 }
  0x54   : > { %363 = vrot.lane.b32.xlu1 %v2582_v32, %s2463_s25  ;;  %359 = vrot.lane.b32.xlu0 %v2594_v36, %s2463_s25 }
  0x58   : > { %371 = vrot.lane.b32.xlu1 %v2585_v33, %s2463_s25  ;;  %367 = vrot.lane.b32.xlu0 %v2601_v39, %s2463_s25 }
  0x5c   : > { %395 = vrot.lane.b32.xlu1 %v2746_v10, %s2462_s24  ;;  %391 = vrot.lane.b32.xlu0 %v2749_v11, %s2462_s24 }
  0x60   : > { %403 = vrot.lane.b32.xlu1 %v2756_v12, %s2462_s24  ;;  %399 = vrot.lane.b32.xlu0 %v2759_v13, %s2462_s24  ;;  %s245_s24 = scalar_lea.vmem %s3488_s5, %s2223_s16 }
  0x64   : > { %417 = vrot.lane.b32.xlu1 %v2713_v7, %s2463_s25  ;;  %415 = vrot.lane.b32.xlu0 %v2749_v11, %s2463_s25 }
  0x68   : > { %421 = vrot.lane.b32.xlu1 %v2710_v6, %s2463_s25  ;;  %419 = vrot.lane.b32.xlu0 %v2746_v10, %s2463_s25 }
  0x6c   : > { %425 = vrot.lane.b32.xlu1 %v2723_v9, %s2463_s25  ;;  %423 = vrot.lane.b32.xlu0 %v2759_v13, %s2463_s25 }
  0x70   : > { %429 = vrot.lane.b32.xlu1 %v2720_v8, %s2463_s25  ;;  %427 = vrot.lane.b32.xlu0 %v2756_v12, %s2463_s25 }
  0x86   : > { %v290_v17 = vpop.permute.xlu1 %289  ;;  %v282_v18 = vpop.permute.xlu0 %281 }
  0x87   : > { %v1083_v20 = vcombine.low %v282_v18, %v290_v17  ;;  %v1084_v25 = vcombine.high %v282_v18, %v290_v17  ;;  %v2801_v17 = vrot.slane %v1283_v51, %v2782_v26 }
  0x89   : > { %v1091_v27 = vrot.slane %v1083_v20, %v2569_v28  ;;  %v1098_v38 = vrot.slane %v1084_v25, %v2569_v28 }
  0x8a   : > { %v294_v21 = vpop.permute.xlu1 %293  ;;  %v286_v22 = vpop.permute.xlu0 %285 }
  0x8b   : > { %v1099_v23 = vcombine.low %v286_v22, %v294_v21  ;;  %v1100_v24 = vcombine.high %v286_v22, %v294_v21 }
  0x8d   : > { %v1107_v29 = vrot.slane %v1099_v23, %v2569_v28  ;;  %v1114_v32 = vrot.slane %v1100_v24, %v2569_v28  ;;  %v1130_v24 = vrot.slane %v1116_v52, %v2782_v26 }
  0x8e   : > { %v310_v33 = vpop.permute.xlu1 %309  ;;  %v306_v36 = vpop.permute.xlu0 %305 }
  0x8f   : > { %v1147_v37 = vcombine.low %v1091_v27, %v1107_v29  ;;  %v1148_v39 = vcombine.high %v1091_v27, %v1107_v29  ;;  %v1163_v43 = vcombine.low %v1098_v38, %v1114_v32  ;;  %v1164_v50 = vcombine.high %v1098_v38, %v1114_v32 }
  0x91   : > { %v2795_v14 = vrot.slane %v1147_v37, %v2782_v26  ;;  %v1162_v22 = vrot.slane %v1148_v39, %v2782_v26  ;;  %v1298_v37 = vrot.slane %v1284_v53, %v2782_v26  ;;  %v1314_v53 = vrot.slane %v1300_v0, %v2782_v26 }
  0x92   : > { %v318_v15 = vpop.permute.xlu1 %317  ;;  %v314_v16 = vpop.permute.xlu0 %313 }
  0x93   : > { %v1203_v18 = vcombine.low %v310_v33, %v318_v15  ;;  %v1204_v19 = vcombine.high %v310_v33, %v318_v15  ;;  %v1187_v20 = vcombine.low %v306_v36, %v314_v16  ;;  %v1188_v21 = vcombine.high %v306_v36, %v314_v16 }
  0x94   : > { %v1171_v33 = vrot.slane %v1163_v43, %v2782_v26  ;;  %v1178_v15 = vrot.slane %v1164_v50, %v2782_v26  ;;  %v1180_v16 = vcombine.high %v2792_v42, %v2795_v14  ;;  %v1181_v56 = vcombine.low %v1130_v24, %v1162_v22 }
  0x95   : > { %v1211_v25 = vrot.slane %v1203_v18, %v2569_v28  ;;  %v1218_v51 = vrot.slane %v1204_v19, %v2569_v28  ;;  %v1195_v27 = vrot.slane %v1187_v20, %v2569_v28  ;;  %v1202_v29 = vrot.slane %v1188_v21, %v2569_v28 }
  0x96   : > { %v284_v36 = vpop.permute.xlu1 %283  ;;  %v280_v32 = vpop.permute.xlu0 %279  ;;  %v1182_v63 = vcombine.high %v1130_v24, %v1162_v22  ;;  %v1183_v20 = vcombine.low %v1139_v30, %v1171_v33  ;;  %v1184_v23 = vcombine.high %v1139_v30, %v1171_v33  ;;  %v1185_v50 = vcombine.low %v1146_v41, %v1178_v15 }
  0x97   : > { %v1251_v52 = vcombine.low %v1195_v27, %v1211_v25  ;;  %v1252_v38 = vcombine.high %v1195_v27, %v1211_v25  ;;  %v1267_v39 = vcombine.low %v1202_v29, %v1218_v51  ;;  %v1268_v43 = vcombine.high %v1202_v29, %v1218_v51 }
  0x98   : > { %v1186_v5 = vcombine.high %v1146_v41, %v1178_v15 }
  0x99   : > { %v2843_v54 = vrot.slane %v1251_v52, %v2782_v26  ;;  %v1266_v55 = vrot.slane %v1252_v38, %v2782_v26  ;;  %v1275_v18 = vrot.slane %v1267_v39, %v2782_v26  ;;  %v1282_v19 = vrot.slane %v1268_v43, %v2782_v26 }
  0x9a   : > { %v292_v31 = vpop.permute.xlu1 %291  ;;  %v288_v35 = vpop.permute.xlu0 %287 }
  0x9b   : > { %v487_v21 = vcombine.low %v284_v36, %v292_v31  ;;  %v488_v46 = vcombine.high %v284_v36, %v292_v31  ;;  %v471_v47 = vcombine.low %v280_v32, %v288_v35  ;;  %v472_v0 = vcombine.high %v280_v32, %v288_v35 }
  0x9c   : > { %v1316_v25 = vcombine.high %v2843_v54, %v2801_v17  ;;  %v1317_v51 = vcombine.low %v1266_v55, %v1298_v37  ;;  %v1318_v27 = vcombine.high %v1266_v55, %v1298_v37  ;;  %v1319_v31 = vcombine.low %v1275_v18, %v1307_v34 }
  0x9d   : > { %v495_v29 = vrot.slane %v487_v21, %v2569_v28  ;;  %v502_v52 = vrot.slane %v488_v46, %v2569_v28  ;;  %v479_v38 = vrot.slane %v471_v47, %v2569_v28  ;;  %v486_v22 = vrot.slane %v472_v0, %v2569_v28 }
  0x9e   : > { %v308_v24 = vpop.permute.xlu1 %307  ;;  %v304_v36 = vpop.permute.xlu0 %303  ;;  %v2252_v39 = vpack.i.bf16 %v1316_v25, %v1180_v16  ;;  %v2262_v32 = vpack.i.bf16 %v1317_v51, %v1181_v56  ;;  %v2272_v43 = vpack.i.bf16 %v1318_v27, %v1182_v63  ;;  %v2282_v37 = vpack.i.bf16 %v1319_v31, %v1183_v20 }
  0x9f   : > { %v535_v35 = vcombine.low %v479_v38, %v495_v29  ;;  %v1320_v55 = vcombine.high %v1275_v18, %v1307_v34  ;;  %v1321_v21 = vcombine.low %v1282_v19, %v1314_v53  ;;  %v1322_v46 = vcombine.high %v1282_v19, %v1314_v53 }
  0xa0   : > { %2253 = vrot.lane.b32.xlu0 %v2252_v39, %s2465_s26  ;;  %v536_v47 = vcombine.high %v479_v38, %v495_v29  ;;  %v551_v4 = vcombine.low %v486_v22, %v502_v52  ;;  %v552_v34 = vcombine.high %v486_v22, %v502_v52 }
  0xa1   : > { %v2860_v0 = vrot.slane %v535_v35, %v2782_v26  ;;  %v2862_v63 = vpack.i.bf16 %v1320_v55, %v1184_v23  ;;  %v2864_v25 = vpack.i.bf16 %v1321_v21, %v1185_v50  ;;  %v2866_v33 = vpack.i.bf16 %v1322_v46, %v1186_v5 }
  0xa2   : > { %v316_v16 = vpop.permute.xlu1 %315  ;;  %v312_v56 = vpop.permute.xlu0 %311  ;;  %v518_v23 = vrot.slane %v504_v57, %v2782_v26  ;;  %v550_v51 = vrot.slane %v536_v47, %v2782_v26  ;;  %v559_v27 = vrot.slane %v551_v4, %v2782_v26  ;;  %v2894_v4 = vrot.slane %v671_v2, %v2782_v26 }
  0xa3   : > { %3499 = vst [vmem:[#allocation3_spill] sm:$0xff] %v2860_v0  ;;  %v591_v30 = vcombine.low %v308_v24, %v316_v16  ;;  %v592_v15 = vcombine.high %v308_v24, %v316_v16  ;;  %v575_v41 = vcombine.low %v304_v36, %v312_v56  ;;  %v576_v20 = vcombine.high %v304_v36, %v312_v56 }
  0xa4   : > { %2263 = vrot.lane.b32.xlu0 %v2262_v32, %s2466_s27  ;;  %v702_v36 = vrot.slane %v3501_v1, %v2782_v26  ;;  %v566_v39 = vrot.slane %v552_v34, %v2782_v26  ;;  %v568_v58 = vcombine.high %v2832_v40, %v2860_v0  ;;  %v569_v31 = vcombine.low %v518_v23, %v550_v51 }
  0xa5   : > { %v599_v18 = vrot.slane %v591_v30, %v2569_v28  ;;  %v606_v5 = vrot.slane %v592_v15, %v2569_v28  ;;  %v583_v19 = vrot.slane %v575_v41, %v2569_v28  ;;  %v590_v50 = vrot.slane %v576_v20, %v2569_v28 }
  0xa6   : > { %v342_v29 = vpop.permute.xlu1 %341  ;;  %v338_v52 = vpop.permute.xlu0 %337  ;;  %v570_v35 = vcombine.high %v518_v23, %v550_v51  ;;  %v571_v55 = vcombine.low %v527_v44, %v559_v27  ;;  %v572_v46 = vcombine.high %v527_v44, %v559_v27  ;;  %v574_v44 = vcombine.high %v534_v45, %v566_v39 }
  0xa7   : > { %v639_v57 = vcombine.low %v583_v19, %v599_v18  ;;  %v640_v38 = vcombine.high %v583_v19, %v599_v18  ;;  %v655_v22 = vcombine.low %v590_v50, %v606_v5  ;;  %v656_v24 = vcombine.high %v590_v50, %v606_v5 }
  0xa8   : > { %2273 = vrot.lane.b32.xlu0 %v2272_v43, %s2467_s28 }
  0xa9   : > { %v2910_v2 = vrot.slane %v639_v57, %v2782_v26  ;;  %v654_v32 = vrot.slane %v640_v38, %v2782_v26  ;;  %v663_v60 = vrot.slane %v655_v22, %v2782_v26  ;;  %v670_v59 = vrot.slane %v656_v24, %v2782_v26 }
  0xaa   : > { %v350_v3 = vpop.permute.xlu1 %349  ;;  %v346_v43 = vpop.permute.xlu0 %345 }
  0xab   : > { %v1340_v61 = vcombine.high %v342_v29, %v350_v3  ;;  %v1324_v21 = vcombine.high %v338_v52, %v346_v43  ;;  %v704_v16 = vcombine.high %v2910_v2, %v2894_v4  ;;  %v705_v56 = vcombine.low %v654_v32, %v686_v62 }
  0xac   : > { %2283 = vrot.lane.b32.xlu0 %v2282_v37, %s2468_s29  ;;  %v706_v30 = vcombine.high %v654_v32, %v686_v62  ;;  %v1339_v15 = vcombine.low %v342_v29, %v350_v3  ;;  %v1323_v20 = vcombine.low %v338_v52, %v346_v43  ;;  %v707_v50 = vcombine.low %v663_v60, %v695_v49 }
  0xad   : > { %v2923_v41 = vrot.slane %v1340_v61, %v2569_v28  ;;  %v2926_v34 = vrot.slane %v1324_v21, %v2569_v28  ;;  %v2257_v37 = vpack.i.bf16 %v704_v16, %v568_v58  ;;  %v2267_v5 = vpack.i.bf16 %v705_v56, %v569_v31 }
  0xae   : > { %v2928_v23 = vpop.permute.xlu1 %365  ;;  %v2930_v18 = vpop.permute.xlu0 %361  ;;  %v2277_v19 = vpack.i.bf16 %v706_v30, %v570_v35  ;;  %v573_v29 = vcombine.low %v534_v45, %v566_v39  ;;  %v2287_v52 = vpack.i.bf16 %v707_v50, %v571_v55  ;;  %v708_v57 = vcombine.high %v663_v60, %v695_v49 }
  0xaf   : > { %2258 = vrot.lane.b32.xlu1 %v2257_v37, %s2465_s26  ;;  %v709_v38 = vcombine.low %v670_v59, %v702_v36  ;;  %v710_v22 = vcombine.high %v670_v59, %v702_v36  ;;  %v2938_v24 = vrot.slane %v1339_v15, %v2569_v28  ;;  %v2941_v62 = vrot.slane %v1323_v20, %v2569_v28 }
  0xb0   : > { %v2307_v32 = vpack.i.bf16 %v708_v57, %v572_v46  ;;  %v1475_v36 = vcombine.low %v2710_v6, %v2720_v8  ;;  %v1459_v39 = vcombine.low %v2713_v7, %v2723_v9 }
  0xb1   : > { %v2327_v58 = vpack.i.bf16 %v709_v38, %v573_v29  ;;  %v2947_v3 = vpack.i.bf16 %v710_v22, %v574_v44  ;;  %v1387_v60 = vcombine.low %v2941_v62, %v2938_v24 }
  0xb2   : > { %v2943_v48 = vpop.permute.xlu1 %373  ;;  %v2945_v1 = vpop.permute.xlu0 %369  ;;  %v2973_v61 = vrot.slane %v1475_v36, %v2569_v28  ;;  %v2976_v21 = vrot.slane %v1459_v39, %v2569_v28 }
  0xb3   : > { %v1371_v45 = vcombine.low %v2928_v23, %v2943_v48  ;;  %v1355_v49 = vcombine.low %v2930_v18, %v2945_v1  ;;  %2268 = vrot.lane.b32.xlu1 %v2267_v5, %s2466_s27  ;;  %v2980_v46 = vrot.slane %v1387_v60, %v2782_v26 }
  0xb4   : > { %v1523_v5 = vcombine.low %v2976_v21, %v2973_v61 }
  0xb5   : > { %v2961_v43 = vrot.slane %v1371_v45, %v2569_v28  ;;  %v2964_v31 = vrot.slane %v1355_v49, %v2569_v28  ;;  %3502 = vst [vmem:[#allocation4_spill] sm:$0xff] %v2980_v46 }
  0xb6   : > { %v2966_v35 = vpop.permute.xlu1 %397  ;;  %v2968_v55 = vpop.permute.xlu0 %393 }
  0xb7   : > { %v1419_v59 = vcombine.low %v2964_v31, %v2961_v43  ;;  %2278 = vrot.lane.b32.xlu1 %v2277_v19, %s2467_s28  ;;  %v1420_v0 = vcombine.high %v2964_v31, %v2961_v43 }
  0xb9   : > { %v2983_v16 = vrot.slane %v1419_v59, %v2782_v26 }
  0xba   : > { %v2985_v56 = vpop.permute.xlu1 %405  ;;  %v2987_v30 = vpop.permute.xlu0 %401 }
  0xbb   : > { %3503 = vst [vmem:[#allocation5_spill] sm:$0xff] %v2983_v16  ;;  %v1507_v20 = vcombine.low %v2966_v35, %v2985_v56  ;;  %v1491_v37 = vcombine.low %v2968_v55, %v2987_v30  ;;  %2288 = vrot.lane.b32.xlu1 %v2287_v52, %s2468_s29  ;;  %v3013_v52 = vrot.slane %v1523_v5, %v2782_v26 }
  0xbc   : > { %v1452_v49 = vcombine.high %v2980_v46, %v2983_v16  ;;  %v1476_v16 = vcombine.high %v2710_v6, %v2720_v8 }
  0xbd   : > { %v2999_v19 = vrot.slane %v1507_v20, %v2569_v28  ;;  %v3002_v50 = vrot.slane %v1491_v37, %v2569_v28  ;;  %3504 = vst [vmem:[#allocation6_spill] sm:$0xff] %v3013_v52 }
  0xbe   : > { %v3004_v29 = vpop.permute.xlu1 %339  ;;  %v3006_v44 = vpop.permute.xlu0 %335 }
  0xbf   : > { %v1555_v57 = vcombine.low %v3002_v50, %v2999_v19  ;;  %2298 = vrot.lane.b32.xlu1 %v2862_v63, %s2469_s30  ;;  %v863_v63 = vcombine.low %v2746_v10, %v2756_v12  ;;  %v1556_v6 = vcombine.high %v3002_v50, %v2999_v19 }
  0xc1   : > { %v3016_v38 = vrot.slane %v1555_v57, %v2782_v26  ;;  %v871_v27 = vrot.slane %v863_v63, %v2569_v28  ;;  %v1460_v63 = vcombine.high %v2713_v7, %v2723_v9  ;;  %v1524_v9 = vcombine.high %v2976_v21, %v2973_v61 }
  0xc2   : > { %v3018_v22 = vpop.permute.xlu1 %347  ;;  %v3020_v45 = vpop.permute.xlu0 %343  ;;  %v864_v61 = vcombine.high %v2746_v10, %v2756_v12  ;;  %v848_v21 = vcombine.high %v2749_v11, %v2759_v13  ;;  %v3127_v43 = vrot.slane %v1556_v6, %v2782_v26  ;;  %v1508_v10 = vcombine.high %v2966_v35, %v2985_v56 }
  0xc3   : > { %3505 = vst [vmem:[#allocation7_spill] sm:$0xff] %v3016_v38  ;;  %2308 = vrot.lane.b32.xlu1 %v2307_v32, %s2469_s30  ;;  %v1588_v36 = vcombine.high %v3013_v52, %v3016_v38  ;;  %v727_v39 = vcombine.low %v3004_v29, %v3018_v22  ;;  %v711_v60 = vcombine.low %v3006_v44, %v3020_v45 }
  0xc4   : > { %v3106_v38 = vrot.slane %v1476_v16, %v2569_v28  ;;  %v3109_v52 = vrot.slane %v1460_v63, %v2569_v28  ;;  %v1388_v16 = vcombine.high %v2941_v62, %v2938_v24  ;;  %v1356_v56 = vcombine.high %v2930_v18, %v2945_v1 }
  0xc5   : > { %v2292_v32 = vpack.i.bf16 %v1588_v36, %v1452_v49  ;;  %v3041_v37 = vrot.slane %v727_v39, %v2569_v28  ;;  %v3044_v5 = vrot.slane %v711_v60, %v2569_v28  ;;  %v847_v49 = vcombine.low %v2749_v11, %v2759_v13 }
  0xc6   : > { %v3033_v59 = vpop.permute.xlu1 %363  ;;  %v3035_v20 = vpop.permute.xlu0 %359  ;;  %v1492_v11 = vcombine.high %v2968_v55, %v2987_v30  ;;  %v1402_v35 = vrot.slane %v1388_v16, %v2782_v26  ;;  %v1372_v55 = vcombine.high %v2928_v23, %v2943_v48  ;;  %v3175_v23 = vrot.slane %v1508_v10, %v2569_v28 }
  0xc7   : > { %2293 = vrot.lane.b32.xlu0 %v2292_v32, %s2465_s26  ;;  %2318 = vrot.lane.b32.xlu1 %v2864_v25, %s2470_s6  ;;  %v775_v39 = vcombine.low %v3044_v5, %v3041_v37  ;;  %v855_v51 = vrot.slane %v847_v49, %v2569_v28  ;;  %v3197_v16 = vrot.slane %v1356_v56, %v2569_v28 }
  0xc8   : > { %v3178_v18 = vrot.slane %v1492_v11, %v2569_v28 }
  0xc9   : > { %v912_v63 = vcombine.high %v855_v51, %v871_v27 }
  0xca   : > { %v3046_v57 = vpop.permute.xlu1 %371  ;;  %v3048_v15 = vpop.permute.xlu0 %367 }
  0xcb   : > { %v759_v36 = vcombine.low %v3033_v59, %v3046_v57  ;;  %v743_v25 = vcombine.low %v3035_v20, %v3048_v15  ;;  %2328 = vrot.lane.b32.xlu1 %v2327_v58, %s2470_s6  ;;  %v3162_v30 = vrot.slane %v912_v63, %v2782_v26 }
  0xcd   : > { %v3062_v60 = vrot.slane %v759_v36, %v2569_v28  ;;  %v3065_v32 = vrot.slane %v743_v25, %v2569_v28  ;;  %v3078_v36 = vrot.slane %v775_v39, %v2782_v26 }
  0xce   : > { %v3067_v53 = vpop.permute.xlu1 %395  ;;  %v3069_v47 = vpop.permute.xlu0 %391 }
  0xcf   : > { %v807_v58 = vcombine.low %v3065_v32, %v3062_v60  ;;  %2338 = vrot.lane.b32.xlu1 %v2866_v33, %s2471_s7 }
  0xd1   : > { %v3081_v25 = vrot.slane %v807_v58, %v2782_v26  ;;  %v911_v58 = vcombine.low %v855_v51, %v871_v27  ;;  %v1539_v51 = vcombine.low %v3109_v52, %v3106_v38  ;;  %v808_v27 = vcombine.high %v3065_v32, %v3062_v60 }
  0xd2   : > { %v3087_v49 = vpop.permute.xlu1 %403  ;;  %v3089_v46 = vpop.permute.xlu0 %399  ;;  %v776_v60 = vcombine.high %v3044_v5, %v3041_v37  ;;  %v3185_v37 = vrot.slane %v848_v21, %v2569_v28 }
  0xd3   : > { %v895_v33 = vcombine.low %v3067_v53, %v3087_v49  ;;  %v879_v39 = vcombine.low %v3069_v47, %v3089_v46  ;;  %2348 = vrot.lane.b32.xlu1 %v2947_v3, %s2471_s7  ;;  %v3118_v50 = vrot.slane %v911_v58, %v2782_v26  ;;  %v3136_v58 = vrot.slane %v1420_v0, %v2782_v26 }
  0xd4   : > { %v840_v0 = vcombine.high %v3078_v36, %v3081_v25  ;;  %v822_v5 = vrot.slane %v808_v27, %v2782_v26  ;;  %v896_v63 = vcombine.high %v3067_v53, %v3087_v49  ;;  %v880_v21 = vcombine.high %v3069_v47, %v3089_v46 }
  0xd5   : > { %v903_v7 = vrot.slane %v895_v33, %v2569_v28  ;;  %v887_v8 = vrot.slane %v879_v39, %v2569_v28  ;;  %v3133_v39 = vrot.slane %v1524_v9, %v2782_v26  ;;  %v1453_v9 = vcombine.low %v1402_v35, %v3136_v58 }
  0xd6   : > { %v3113_v3 = vpop.permute.xlu1 %417  ;;  %v3115_v40 = vpop.permute.xlu0 %415  ;;  %v1571_v27 = vcombine.low %v3178_v18, %v3175_v23  ;;  %v760_v53 = vcombine.high %v3033_v59, %v3046_v57  ;;  %v3230_v59 = vrot.slane %v896_v63, %v2569_v28  ;;  %v3233_v57 = vrot.slane %v880_v21, %v2569_v28 }
  0xd7   : > { %v943_v19 = vcombine.low %v887_v8, %v903_v7  ;;  %v944_v31 = vcombine.high %v887_v8, %v903_v7  ;;  %v1589_v7 = vcombine.low %v3133_v39, %v3127_v43  ;;  %v3172_v8 = vrot.slane %v864_v61, %v2569_v28 }
  0xd8   : > { %v3194_v61 = vrot.slane %v1372_v55, %v2569_v28  ;;  %v3246_v63 = vrot.slane %v760_v53, %v2569_v28  ;;  %v1454_v21 = vcombine.high %v1402_v35, %v3136_v58  ;;  %v959_v53 = vcombine.low %v3233_v57, %v3230_v59 }
  0xd9   : > { %v3130_v33 = vrot.slane %v943_v19, %v2782_v26  ;;  %v3167_v32 = vrot.slane %v944_v31, %v2782_v26  ;;  %v3191_v19 = vrot.slane %v1539_v51, %v2782_v26  ;;  %v790_v31 = vrot.slane %v776_v60, %v2782_v26 }
  0xda   : > { %v3142_v12 = vpop.permute.xlu1 %421  ;;  %v3144_v13 = vpop.permute.xlu0 %419  ;;  %v2312_v11 = vpack.i.bf16 %v1589_v7, %v1453_v9  ;;  %v1435_v9 = vcombine.low %v3197_v16, %v3194_v61 }
  0xdb   : > { %v976_v24 = vcombine.high %v3118_v50, %v3130_v33  ;;  %v977_v51 = vcombine.low %v3162_v30, %v3167_v32 }
  0xdc   : > { %v1443_v35 = vrot.slane %v1435_v9, %v2782_v26 }
  0xdd   : > { %v2302_v6 = vpack.i.bf16 %v976_v24, %v840_v0  ;;  %v728_v0 = vcombine.high %v3004_v29, %v3018_v22  ;;  %v744_v24 = vcombine.high %v3035_v20, %v3048_v15  ;;  %v841_v29 = vcombine.low %v790_v31, %v822_v5 }
  0xde   : > { %v3180_v48 = vpop.permute.xlu1 %425  ;;  %v3182_v1 = vpop.permute.xlu0 %423  ;;  %v712_v22 = vcombine.high %v3006_v44, %v3020_v45  ;;  %v1590_v15 = vcombine.high %v3133_v39, %v3127_v43  ;;  %v927_v45 = vcombine.low %v3185_v37, %v3172_v8 }
  0xdf   : > { %2303 = vrot.lane.b32.xlu0 %v2302_v6, %s2465_s26  ;;  %v1595_v10 = vcombine.low %v3113_v3, %v3180_v48  ;;  %v983_v47 = vcombine.low %v3115_v40, %v3182_v1  ;;  %v2322_v7 = vpack.i.bf16 %v977_v51, %v841_v29  ;;  %v3249_v43 = vrot.slane %v744_v24, %v2569_v28 }
  0xe0   : > { %v3258_v51 = vrot.slane %v712_v22, %v2569_v28  ;;  %v3495_v29 = vmov 0.0  }
  0xe1   : > { %v1603_v20 = vrot.slane %v1595_v10, %v2569_v28  ;;  %v991_v44 = vrot.slane %v983_v47, %v2569_v28  ;;  %v1579_v10 = vrot.slane %v1571_v27, %v2782_v26  ;;  %v823_v27 = vcombine.low %v3249_v43, %v3246_v63 }
  0xe2   : > { %v3216_v46 = vpop.permute.xlu1 %429  ;;  %v3218_v49 = vpop.permute.xlu0 %427 }
  0xe3   : > { %v1611_v55 = vcombine.low %v3142_v12, %v3216_v46  ;;  %v999_v56 = vcombine.low %v3144_v13, %v3218_v49  ;;  %2313 = vrot.lane.b32.xlu0 %v2312_v11, %s2466_s27  ;;  %v3255_v11 = vrot.slane %v728_v0, %v2569_v28  ;;  %v842_v0 = vcombine.high %v790_v31, %v822_v5 }
  0xe4   : > { %v1591_v31 = vcombine.low %v3191_v19, %v1579_v10  ;;  %v1592_v62 = vcombine.high %v3191_v19, %v1579_v10 }
  0xe5   : > { %v1619_v60 = vrot.slane %v1611_v55, %v2569_v28  ;;  %v1007_v6 = vrot.slane %v999_v56, %v2569_v28  ;;  %v2332_v55 = vpack.i.bf16 %v1590_v15, %v1454_v21  ;;  %v978_v56 = vcombine.high %v3162_v30, %v3167_v32 }
  0xe6   : > { %v3507_v15 = vcombine.low %v2926_v34, %v2923_v41  ;;  %v791_v9 = vcombine.low %v3258_v51, %v3255_v11 }
  0xe7   : > { %v1627_v39 = vcombine.low %v1603_v20, %v1619_v60  ;;  %2323 = vrot.lane.b32.xlu0 %v2322_v7, %s2466_s27  ;;  %v1015_v47 = vcombine.low %v991_v44, %v1007_v6  ;;  %v935_v7 = vrot.slane %v927_v45, %v2782_v26  ;;  %v2342_v5 = vpack.i.bf16 %v978_v56, %v842_v0 }
  0xe8   : > { %v1411_v30 = vrot.slane %v3507_v15, %v2782_v26  ;;  %v1628_v21 = vcombine.high %v1603_v20, %v1619_v60  ;;  %v831_v15 = vrot.slane %v823_v27, %v2782_v26  ;;  %v1572_v45 = vcombine.high %v3178_v18, %v3175_v23 }
  0xe9   : > { %v3263_v24 = vrot.slane %v1627_v39, %v2782_v26  ;;  %v3268_v58 = vrot.slane %v1015_v47, %v2782_v26  ;;  %v967_v39 = vrot.slane %v959_v53, %v2782_v26  ;;  %v1016_v47 = vcombine.high %v991_v44, %v1007_v6 }
  0xea   : > { %v1540_v53 = vcombine.high %v3109_v52, %v3106_v38  ;;  %v799_v20 = vrot.slane %v791_v9, %v2782_v26  ;;  %v1642_v56 = vrot.slane %v1628_v21, %v2782_v26  ;;  %v1436_v27 = vcombine.high %v3197_v16, %v3194_v61 }
  0xeb   : > { %3506 = vst [vmem:[#allocation8_spill] sm:$0xff] %v3268_v58  ;;  %2333 = vrot.lane.b32.xlu0 %v2332_v55, %s2467_s28  ;;  %v1659_v22 = vcombine.high %v3263_v24, %v3495_v29  ;;  %v1047_v32 = vcombine.high %v3268_v58, %v3495_v29  ;;  %v1455_v29 = vcombine.low %v1411_v30, %v1443_v35 }
  0xec   : > { %v1456_v58 = vcombine.high %v1411_v30, %v1443_v35  ;;  %v979_v6 = vcombine.low %v935_v7, %v967_v39  ;;  %v980_v19 = vcombine.high %v935_v7, %v967_v39  ;;  %v1030_v10 = vrot.slane %v1016_v47, %v2782_v26 }
  0xed   : > { %v2357_v55 = vpack.i.bf16 %v1659_v22, %v1047_v32  ;;  %v2352_v60 = vpack.i.bf16 %v1591_v31, %v1455_v29  ;;  %v843_v23 = vcombine.low %v799_v20, %v831_v15  ;;  %v1586_v18 = vrot.slane %v1572_v45, %v2782_v26 }
  0xee   : > { %v2367_v44 = vpack.i.bf16 %v1592_v62, %v1456_v58  ;;  %v844_v52 = vcombine.high %v799_v20, %v831_v15  ;;  %v1554_v38 = vrot.slane %v1540_v53, %v2782_v26  ;;  %v928_v62 = vcombine.high %v3185_v37, %v3172_v8 }
  0xef   : > { %2343 = vrot.lane.b32.xlu0 %v2342_v5, %s2467_s28  ;;  %2358 = vrot.lane.b32.xlu1 %v2357_v55, %s2465_s26  ;;  %v960_v58 = vcombine.high %v3233_v57, %v3230_v59  ;;  %v1612_v35 = vcombine.high %v3142_v12, %v3216_v46  ;;  %v1000_v61 = vcombine.high %v3144_v13, %v3218_v49  ;;  %v3508_v29 = vmov 0.0  }
  0xf0   : > { %v2362_v16 = vpack.i.bf16 %v979_v6, %v843_v23  ;;  %v2377_v0 = vpack.i.bf16 %v980_v19, %v844_v52  ;;  %v1048_v22 = vcombine.high %v1030_v10, %v3508_v29  ;;  %v1660_v30 = vcombine.high %v1642_v56, %v3508_v29 }
  0xf1   : > { %v1450_v32 = vrot.slane %v1436_v27, %v2782_v26  ;;  %v824_v8 = vcombine.high %v3249_v43, %v3246_v63  ;;  %v1596_v37 = vcombine.high %v3113_v3, %v3180_v48  ;;  %v984_v12 = vcombine.high %v3115_v40, %v3182_v1 }
  0xf2   : > { %v3509_v13 = vcombine.high %v2926_v34, %v2923_v41  ;;  %v792_v49 = vcombine.high %v3258_v51, %v3255_v11  ;;  %v1593_v59 = vcombine.low %v1554_v38, %v1586_v18  ;;  %v942_v57 = vrot.slane %v928_v62, %v2782_v26 }
  0xf3   : > { %2353 = vrot.lane.b32.xlu0 %v2352_v60, %s2468_s29  ;;  %2368 = vrot.lane.b32.xlu1 %v2367_v44, %s2469_s30  ;;  %v974_v3 = vrot.slane %v960_v58, %v2782_v26  ;;  %v1626_v48 = vrot.slane %v1612_v35, %v2569_v28  ;;  %v1014_v40 = vrot.slane %v1000_v61, %v2569_v28  ;;  %v2027_v58 = vld [vmem:[%s3485_s2] sm:$0xff] }
  0xf4   : > { %v1418_v46 = vrot.slane %v3509_v13, %v2782_v26  ;;  %v2372_v1 = vpack.i.bf16 %v1642_v56, %v1030_v10  ;;  %v2387_v63 = vpack.i.bf16 %v1660_v30, %v1048_v22  ;;  %v1594_v43 = vcombine.high %v1554_v38, %v1586_v18 }
  0xf5   : > { %v838_v41 = vrot.slane %v824_v8, %v2782_v26  ;;  %v1610_v34 = vrot.slane %v1596_v37, %v2569_v28  ;;  %v998_v11 = vrot.slane %v984_v12, %v2569_v28  ;;  %v806_v7 = vrot.slane %v792_v49, %v2782_v26 }
  0xf6   : > { %v1457_v51 = vcombine.low %v1418_v46, %v1450_v32  ;;  %v1458_v9 = vcombine.high %v1418_v46, %v1450_v32  ;;  %v981_v21 = vcombine.low %v942_v57, %v974_v3  ;;  %v982_v45 = vcombine.high %v942_v57, %v974_v3 }
  0xf7   : > { %2363 = vrot.lane.b32.xlu0 %v2362_v16, %s2468_s29  ;;  %2378 = vrot.lane.b32.xlu1 %v2377_v0, %s2469_s30  ;;  %v1643_v39 = vcombine.low %v1610_v34, %v1626_v48  ;;  %v1031_v5 = vcombine.low %v998_v11, %v1014_v40  ;;  %v1644_v47 = vcombine.high %v1610_v34, %v1626_v48 }
  0xf8   : > { %v2382_v31 = vpack.i.bf16 %v1593_v59, %v1457_v51  ;;  %v1032_v55 = vcombine.high %v998_v11, %v1014_v40  ;;  %v2397_v15 = vpack.i.bf16 %v1594_v43, %v1458_v9  ;;  %v845_v53 = vcombine.low %v806_v7, %v838_v41 }
  0xf9   : > { %v846_v28 = vcombine.high %v806_v7, %v838_v41  ;;  %v1039_v60 = vrot.slane %v1031_v5, %v2782_v26  ;;  %v1651_v6 = vrot.slane %v1643_v39, %v2782_v26  ;;  %v1658_v10 = vrot.slane %v1644_v47, %v2782_v26 }
  0xfa   : > { %v2392_v20 = vpack.i.bf16 %v981_v21, %v845_v53  ;;  %v1046_v19 = vrot.slane %v1032_v55, %v2782_v26  ;;  %v2473_v26 = vmov 0   ;;  %v3511_v41 = vcombine.low %v2792_v42, %v2795_v14  ;;  %v3514_v53 = vld [vmem:[#allocation3_spill] sm:$0xff] }
  0xfb   : > { %2373 = vrot.lane.b32.xlu0 %v2372_v1, %s2466_s27  ;;  %2388 = vrot.lane.b32.xlu1 %v2387_v63, %s2467_s28  ;;  %v2407_v44 = vpack.i.bf16 %v982_v45, %v846_v28  ;;  %v2402_v56 = vpack.i.bf16 %v1651_v6, %v1039_v60  ;;  %v1049_v27 = vcombine.high %v1039_v60, %v3508_v29  ;;  %v3513_v45 = vld [vmem:[#allocation2_spill] sm:$0xff] }
  0xfc   : > { %v1661_v23 = vcombine.high %v1651_v6, %v3508_v29  ;;  %v2417_v18 = vpack.i.bf16 %v1658_v10, %v1046_v19  ;;  %v1050_v38 = vcombine.high %v1046_v19, %v3508_v29  ;;  %v1662_v62 = vcombine.high %v1658_v10, %v3508_v29  ;;  %2076 = vmatprep.mubr.bf16.mxu0 %v2473_v26 }
  0xfd   : > { %2427 = vset.pattern.permute.xlu1 %v2473_v26  ;;  %2428 = vset.pattern.permute.xlu0 %v2473_v26  ;;  %v3510_v63 = vcombine.low %v2843_v54, %v2801_v17  ;;  %v3512_v14 = vcombine.low %v2910_v2, %v2894_v4  ;;  %v3515_v28 = vcombine.low %v3513_v45, %v3514_v53  ;;  %v3517_v45 = vld [vmem:[#allocation7_spill] sm:$0xff] }
  0xfe   : > { %v2412_v52 = vpack.i.bf16 %v1661_v23, %v1049_v27  ;;  %v2422_v35 = vpack.i.bf16 %v1662_v62, %v1050_v38 }
  0xff   : > { %2383 = vrot.lane.b32.xlu0 %v2382_v31, %s2470_s6  ;;  %2398 = vrot.lane.b32.xlu1 %v2397_v15, %s2471_s7 }
 0x103   : > { %2393 = vrot.lane.b32.xlu0 %v2392_v20, %s2470_s6  ;;  %2408 = vrot.lane.b32.xlu1 %v2407_v44, %s2471_s7 }
 0x107   : > { %2403 = vrot.lane.b32.xlu0 %v2402_v56, %s2468_s29  ;;  %2418 = vrot.lane.b32.xlu1 %v2417_v18, %s2470_s6 }
 0x10b   : > { %2413 = vrot.lane.b32.xlu0 %v2412_v52, %s2469_s30  ;;  %2030 = vperm.xlu1 %2427, %v2027_v58  }
 0x10f   : > { %2423 = vrot.lane.b32.xlu0 %v2422_v35, %s2471_s7 }
 0x112   : > { %v2254_v16 = vpop.permute.xlu0 %2253 }
 0x113   : > { %v2256_v12 = vunpack.i.h.bf16 %v2254_v16  ;;  %v2255_v13 = vunpack.i.l.bf16 %v2254_v16 }
 0x115   : > { %v1986_v43 = vsel %vm1943_vm0, %v3510_v63, %v2256_v12  ;;  %v1985_v34 = vsel %vm1943_vm0, %v3511_v41, %v2255_v13 }
 0x116   : > { %v2264_v30 = vpop.permute.xlu0 %2263 }
 0x117   : > { %v2266_v49 = vunpack.i.h.bf16 %v2264_v30  ;;  %v2265_v59 = vunpack.i.l.bf16 %v2264_v30 }
 0x119   : > { %v1990_v7 = vsel %vm1949_vm1, %v1985_v34, %v2265_v59  ;;  %v1991_v9 = vsel %vm1949_vm1, %v1986_v43, %v2266_v49 }
 0x11a   : > { %v2274_v32 = vpop.permute.xlu0 %2273 }
 0x11b   : > { %v2276_v57 = vunpack.i.h.bf16 %v2274_v32  ;;  %v2275_v3 = vunpack.i.l.bf16 %v2274_v32 }
 0x11d   : > { %v1995_v31 = vsel %vm1955_vm2, %v1990_v7, %v2275_v3  ;;  %v1996_v21 = vsel %vm1955_vm2, %v1991_v9, %v2276_v57 }
 0x11e   : > { %v2284_v46 = vpop.permute.xlu0 %2283 }
 0x11f   : > { %v2286_v40 = vunpack.i.h.bf16 %v2284_v46  ;;  %v2285_v1 = vunpack.i.l.bf16 %v2284_v46 }
 0x121   : > { %v2259_v61 = vpop.permute.xlu1 %2258  ;;  %v2000_v55 = vsel %vm1961_vm3, %v1995_v31, %v2285_v1  ;;  %v2001_v42 = vsel %vm1961_vm3, %v1996_v21, %v2286_v40 }
 0x122   : > { %v2261_v11 = vunpack.i.h.bf16 %v2259_v61  ;;  %v2260_v51 = vunpack.i.l.bf16 %v2259_v61 }
 0x124   : > { %v1945_v15 = vsel %vm1943_vm0, %v3512_v14, %v2261_v11  ;;  %v1944_v20 = vsel %vm1943_vm0, %v3515_v28, %v2260_v51 }
 0x125   : > { %v2269_v0 = vpop.permute.xlu1 %2268 }
 0x126   : > { %v2271_v39 = vunpack.i.h.bf16 %v2269_v0  ;;  %v2270_v5 = vunpack.i.l.bf16 %v2269_v0 }
 0x128   : > { %v1950_v44 = vsel %vm1949_vm1, %v1944_v20, %v2270_v5  ;;  %v1951_v19 = vsel %vm1949_vm1, %v1945_v15, %v2271_v39  ;;  %v3516_v15 = vld [vmem:[#allocation6_spill] sm:$0xff]  ;;  %v3519_v20 = vld [vmem:[#allocation4_spill] sm:$0xff] }
 0x129   : > { %v2279_v22 = vpop.permute.xlu1 %2278  ;;  %v3518_v53 = vcombine.low %v3516_v15, %v3517_v45 }
 0x12a   : > { %v2281_v10 = vunpack.i.h.bf16 %v2279_v22  ;;  %v2280_v56 = vunpack.i.l.bf16 %v2279_v22 }
 0x12c   : > { %v1956_v0 = vsel %vm1955_vm2, %v1950_v44, %v2280_v56  ;;  %v1957_v22 = vsel %vm1955_vm2, %v1951_v19, %v2281_v10 }
 0x12d   : > { %v3358_v29 = vpop.permute.xlu1 %2288 }
 0x12e   : > { %v2291_v27 = vunpack.i.h.bf16 %v3358_v29  ;;  %v2290_v23 = vunpack.i.l.bf16 %v3358_v29 }
 0x130   : > { %v1962_v32 = vsel %vm1961_vm3, %v1956_v0, %v2290_v23 }
 0x131   : > { %v2299_v8 = vpop.permute.xlu1 %2298 }
 0x132   : > { %v2301_v17 = vunpack.i.h.bf16 %v2299_v8  ;;  %v2300_v54 = vunpack.i.l.bf16 %v2299_v8  ;;  %v1963_v8 = vsel %vm1961_vm3, %v1957_v22, %v2291_v27  ;;  %v3523_v22 = vcombine.low %v3078_v36, %v3081_v25 }
 0x134   : > { %v2005_v2 = vsel %vm1967_vm4, %v2000_v55, %v2300_v54  ;;  %v2006_v18 = vsel %vm1967_vm4, %v2001_v42, %v2301_v17 }
 0x135   : > { %v3360_v37 = vpop.permute.xlu1 %2308 }
 0x136   : > { %v2311_v52 = vunpack.i.h.bf16 %v3360_v37  ;;  %v2310_v38 = vunpack.i.l.bf16 %v3360_v37 }
 0x138   : > { %v1968_v13 = vsel %vm1967_vm4, %v1962_v32, %v2310_v38  ;;  %v1969_v46 = vsel %vm1967_vm4, %v1963_v8, %v2311_v52 }
 0x139   : > { %v2319_v48 = vpop.permute.xlu1 %2318  ;;  %v2294_v63 = vpop.permute.xlu0 %2293 }
 0x13a   : > { %v2321_v60 = vunpack.i.h.bf16 %v2319_v48  ;;  %v2320_v6 = vunpack.i.l.bf16 %v2319_v48  ;;  %v2296_v5 = vunpack.i.h.bf16 %v2294_v63  ;;  %v2295_v31 = vunpack.i.l.bf16 %v2294_v63 }
 0x13c   : > { %v2010_v61 = vsel %vm1973_vm5, %v2005_v2, %v2320_v6  ;;  %v2011_v16 = vsel %vm1973_vm5, %v2006_v18, %v2321_v60  ;;  %v1988_v28 = vsel %vm1943_vm0, %v3518_v53, %v2296_v5  ;;  %v3520_v60 = vld [vmem:[#allocation5_spill] sm:$0xff] }
 0x13d   : > { %v2329_v47 = vpop.permute.xlu1 %2328  ;;  %v3521_v6 = vcombine.low %v3519_v20, %v3520_v60 }
 0x13e   : > { %v2331_v58 = vunpack.i.h.bf16 %v2329_v47  ;;  %v2330_v35 = vunpack.i.l.bf16 %v2329_v47 }
 0x13f   : > { %v1987_v44 = vsel %vm1943_vm0, %v3521_v6, %v2295_v31 }
 0x140   : > { %v1974_v57 = vsel %vm1973_vm5, %v1968_v13, %v2330_v35  ;;  %v1975_v3 = vsel %vm1973_vm5, %v1969_v46, %v2331_v58 }
 0x141   : > { %v2339_v4 = vpop.permute.xlu1 %2338 }
 0x142   : > { %v2341_v62 = vunpack.i.h.bf16 %v2339_v4  ;;  %v2340_v26 = vunpack.i.l.bf16 %v2339_v4 }
 0x144   : > { %v2015_v30 = vsel %vm1979_vm6, %v2010_v61, %v2340_v26  ;;  %v2016_v29 = vsel %vm1979_vm6, %v2011_v16, %v2341_v62  ;;  %v3522_v26 = vcombine.low %v3118_v50, %v3130_v33 }
 0x145   : > { %v2349_v37 = vpop.permute.xlu1 %2348  ;;  %v2021_v12 = vpack.c.bf16 %v2016_v29, %v2015_v30 }
 0x146   : > { %v2351_v49 = vunpack.i.h.bf16 %v2349_v37  ;;  %v2350_v59 = vunpack.i.l.bf16 %v2349_v37 }
 0x147   : > { %2044 = vmatprep.subr.bf16.mxu0 %v2021_v12 }
 0x148   : > { %v1980_v48 = vsel %vm1979_vm6, %v1974_v57, %v2350_v59  ;;  %v1981_v40 = vsel %vm1979_vm6, %v1975_v3, %v2351_v49 }
 0x149   : > { %v2020_v1 = vpack.c.bf16 %v1981_v40, %v1980_v48 }
 0x14b   : > { %2045 = vmatpush1.bf16.msra.mxu0 %v2020_v1 }
 0x151   : > { %v2304_v43 = vpop.permute.xlu0 %2303 }
 0x152   : > { %v2306_v47 = vunpack.i.h.bf16 %v2304_v43  ;;  %v2305_v19 = vunpack.i.l.bf16 %v2304_v43 }
 0x154   : > { %v1947_v58 = vsel %vm1943_vm0, %v3522_v26, %v2306_v47  ;;  %v1946_v30 = vsel %vm1943_vm0, %v3523_v22, %v2305_v19 }
 0x155   : > { %v2314_v41 = vpop.permute.xlu0 %2313 }
 0x156   : > { %v2316_v21 = vunpack.i.h.bf16 %v2314_v41  ;;  %v2315_v55 = vunpack.i.l.bf16 %v2314_v41 }
 0x158   : > { %v1993_v56 = vsel %vm1949_vm1, %v1988_v28, %v2316_v21  ;;  %v1992_v35 = vsel %vm1949_vm1, %v1987_v44, %v2315_v55  ;;  %v3524_v44 = vld [vmem:[#allocation8_spill] sm:$0xff] }
 0x159   : > { %v2324_v34 = vpop.permute.xlu0 %2323 }
 0x15a   : > { %v2326_v27 = vunpack.i.h.bf16 %v2324_v34  ;;  %v2325_v23 = vunpack.i.l.bf16 %v2324_v34 }
 0x15c   : > { %v1952_v37 = vsel %vm1949_vm1, %v1946_v30, %v2325_v23  ;;  %v1953_v50 = vsel %vm1949_vm1, %v1947_v58, %v2326_v27 }
 0x15d   : > { %v2334_v11 = vpop.permute.xlu0 %2333 }
 0x15e   : > { %v2336_v17 = vunpack.i.h.bf16 %v2334_v11  ;;  %v2335_v10 = vunpack.i.l.bf16 %v2334_v11 }
 0x160   : > { %v1998_v2 = vsel %vm1955_vm2, %v1993_v56, %v2336_v17  ;;  %v1997_v29 = vsel %vm1955_vm2, %v1992_v35, %v2335_v10 }
 0x161   : > { %v2344_v51 = vpop.permute.xlu0 %2343  ;;  %v3406_v7 = vpop.permute.xlu1 %2358 }
 0x162   : > { %v2346_v18 = vunpack.i.h.bf16 %v2344_v51  ;;  %v2345_v52 = vunpack.i.l.bf16 %v2344_v51  ;;  %v2361_v41 = vunpack.i.h.bf16 %v3406_v7  ;;  %v2360_v51 = vunpack.i.l.bf16 %v3406_v7 }
 0x164   : > { %v1958_v12 = vsel %vm1955_vm2, %v1952_v37, %v2345_v52  ;;  %v1959_v13 = vsel %vm1955_vm2, %v1953_v50, %v2346_v18  ;;  %v1989_v28 = vsel %vm1943_vm0, %v3263_v24, %v2361_v41  ;;  %v1948_v19 = vsel %vm1943_vm0, %v3524_v44, %v2360_v51 }
 0x165   : > { %v2354_v9 = vpop.permute.xlu0 %2353  ;;  %v2369_v39 = vpop.permute.xlu1 %2368 }
 0x166   : > { %v2356_v42 = vunpack.i.h.bf16 %v2354_v9  ;;  %v2355_v4 = vunpack.i.l.bf16 %v2354_v9  ;;  %v2371_v38 = vunpack.i.h.bf16 %v2369_v39  ;;  %v2370_v32 = vunpack.i.l.bf16 %v2369_v39 }
 0x168   : > { %v2003_v61 = vsel %vm1961_vm3, %v1998_v2, %v2356_v42  ;;  %v2002_v33 = vsel %vm1961_vm3, %v1997_v29, %v2355_v4 }
 0x169   : > { %v2364_v54 = vpop.permute.xlu0 %2363  ;;  %v2379_v14 = vpop.permute.xlu1 %2378  ;;  %v2008_v46 = vsel %vm1967_vm4, %v2003_v61, %v2371_v38  ;;  %v2007_v40 = vsel %vm1967_vm4, %v2002_v33, %v2370_v32 }
 0x16a   : > { %v2366_v16 = vunpack.i.h.bf16 %v2364_v54  ;;  %v2365_v8 = vunpack.i.l.bf16 %v2364_v54  ;;  %v2381_v49 = vunpack.i.h.bf16 %v2379_v14  ;;  %v2380_v59 = vunpack.i.l.bf16 %v2379_v14 }
 0x16c   : > { %v1965_v25 = vsel %vm1961_vm3, %v1959_v13, %v2366_v16  ;;  %v1964_v1 = vsel %vm1961_vm3, %v1958_v12, %v2365_v8 }
 0x16d   : > { %v2374_v62 = vpop.permute.xlu0 %2373  ;;  %v2389_v0 = vpop.permute.xlu1 %2388  ;;  %v1971_v9 = vsel %vm1967_vm4, %v1965_v25, %v2381_v49  ;;  %v1970_v21 = vsel %vm1967_vm4, %v1964_v1, %v2380_v59 }
 0x16e   : > { %v2376_v42 = vunpack.i.h.bf16 %v2374_v62  ;;  %v2375_v14 = vunpack.i.l.bf16 %v2374_v62  ;;  %v2391_v10 = vunpack.i.h.bf16 %v2389_v0  ;;  %v2390_v56 = vunpack.i.l.bf16 %v2389_v0 }
 0x170   : > { %v1954_v23 = vsel %vm1949_vm1, %v1948_v19, %v2375_v14  ;;  %v1994_v4 = vsel %vm1949_vm1, %v1989_v28, %v2376_v42 }
 0x171   : > { %v2384_v36 = vpop.permute.xlu0 %2383  ;;  %v2399_v48 = vpop.permute.xlu1 %2398  ;;  %v1960_v24 = vsel %vm1955_vm2, %v1954_v23, %v2390_v56  ;;  %v1999_v38 = vsel %vm1955_vm2, %v1994_v4, %v2391_v10 }
 0x172   : > { %v2386_v57 = vunpack.i.h.bf16 %v2384_v36  ;;  %v2385_v3 = vunpack.i.l.bf16 %v2384_v36  ;;  %v2401_v63 = vunpack.i.h.bf16 %v2399_v48  ;;  %v2400_v43 = vunpack.i.l.bf16 %v2399_v48  ;;  %v2026_v36 = vld [vmem:[%s3484_s1] sm:$0xf] }
 0x174   : > { %v2012_v34 = vsel %vm1973_vm5, %v2007_v40, %v2385_v3  ;;  %v2013_v11 = vsel %vm1973_vm5, %v2008_v46, %v2386_v57 }
 0x175   : > { %v2394_v39 = vpop.permute.xlu0 %2393  ;;  %v2017_v5 = vsel %vm1979_vm6, %v2012_v34, %v2400_v43  ;;  %v2018_v31 = vsel %vm1979_vm6, %v2013_v11, %v2401_v63  ;;  %v2409_v47 = vpop.permute.xlu1 %2408 }
 0x176   : > { %v2396_v17 = vunpack.i.h.bf16 %v2394_v39  ;;  %v2395_v54 = vunpack.i.l.bf16 %v2394_v39  ;;  %v2023_v55 = vpack.c.bf16 %v2018_v31, %v2017_v5  ;;  %v2411_v15 = vunpack.i.h.bf16 %v2409_v47 }
 0x177   : > { %v2410_v45 = vunpack.i.l.bf16 %v2409_v47 }
 0x178   : > { %v1976_v53 = vsel %vm1973_vm5, %v1970_v21, %v2395_v54  ;;  %v1977_v7 = vsel %vm1973_vm5, %v1971_v9, %v2396_v17  ;;  %2046 = vmatprep.subr.bf16.mxu0 %v2023_v55 }
 0x179   : > { %v2404_v20 = vpop.permute.xlu0 %2403  ;;  %v1982_v60 = vsel %vm1979_vm6, %v1976_v53, %v2410_v45  ;;  %v1983_v6 = vsel %vm1979_vm6, %v1977_v7, %v2411_v15  ;;  %v2419_v62 = vpop.permute.xlu1 %2418 }
 0x17a   : > { %v2022_v27 = vpack.c.bf16 %v1983_v6, %v1982_v60  ;;  %v2406_v2 = vunpack.i.h.bf16 %v2404_v20  ;;  %v2405_v18 = vunpack.i.l.bf16 %v2404_v20  ;;  %v2421_v22 = vunpack.i.h.bf16 %v2419_v62 }
 0x17b   : > { %v2420_v30 = vunpack.i.l.bf16 %v2419_v62 }
 0x17c   : > { %2047 = vmatpush1.bf16.msra.mxu0 %v2022_v27  ;;  %v1966_v35 = vsel %vm1961_vm3, %v1960_v24, %v2405_v18  ;;  %v2004_v61 = vsel %vm1961_vm3, %v1999_v38, %v2406_v2 }
 0x17d   : > { %v2414_v52 = vpop.permute.xlu0 %2413 }
 0x17e   : > { %v2416_v26 = vunpack.i.h.bf16 %v2414_v52  ;;  %v2415_v58 = vunpack.i.l.bf16 %v2414_v52 }
 0x180   : > { %v1972_v16 = vsel %vm1967_vm4, %v1966_v35, %v2415_v58  ;;  %v2009_v0 = vsel %vm1967_vm4, %v2004_v61, %v2416_v26 }
 0x181   : > { %v2424_v29 = vpop.permute.xlu0 %2423  ;;  %v2014_v37 = vsel %vm1973_vm5, %v2009_v0, %v2421_v22  ;;  %v1978_v50 = vsel %vm1973_vm5, %v1972_v16, %v2420_v30 }
 0x182   : > { %v2426_v32 = vunpack.i.h.bf16 %v2424_v29  ;;  %v2425_v8 = vunpack.i.l.bf16 %v2424_v29 }
 0x184   : > { %v2019_v33 = vsel %vm1979_vm6, %v2014_v37, %v2426_v32  ;;  %v1984_v12 = vsel %vm1979_vm6, %v1978_v50, %v2425_v8 }
 0x185   : > { %v2025_v13 = vpack.c.bf16 %v2019_v33, %v2019_v33  ;;  %v2024_v46 = vpack.c.bf16 %v1984_v12, %v1984_v12 }
 0x187   : > { %2225 = vmatprep.subr.msk.bf16.mxu0 %vm2037_vm7, %v2025_v13  ;;  %v2039_v49 = vsel %vm2037_vm7, %v2024_v46, 0 }
 0x188   : > { %2049 = vmatpush1.bf16.msra.mxu0 %v2039_v49 }
 0x18a   : > { %v2031_v25 = vpop.permute.xlu1 %2030 }
 0x18b   : > { %2226 = vmatmul.mubr.msk.bf16.vlgmr.msra.gmra.mrb[0].mxu0 %vm2033_vm8, %v2026_v36 }
 0x25e   : > { %v2078_v59 = vpop.f32.mrb[0].mxu0 }
 0x25f   : > { %v2079_v57 = vadd.f32 %v2078_v59, %v2031_v25  ;;  %v2080_v3 = vpop.f32.mrb[1].mxu0 }
 0x260   : > { %v2081_v48 = vadd.f32 %v2080_v3, %v2031_v25  ;;  %v2082_v40 = vpop.f32.mrb[2].mxu0 }
 0x261   : > { %2085 = vst [vmem:[%s237_s15] sm:$0xff] %v2079_v57  ;;  %v2083_v1 = vpop.f32.mrb[3].mxu0  ;;  %v2092_v63 = vmul.f32 %v2079_v57, %v2079_v57 }
 0x262   : > { %2086 = vst [vmem:[%s237_s15 + $0x8] sm:$0xff] %v2081_v48  ;;  %v2087_v43 = vadd.f32 %v2081_v48, %v2079_v57  ;;  %v2093_v41 = vmul.f32 %v2081_v48, %v2081_v48 }
 0x264   : > { %2088 = vadd.xlane.f32.xlu0 %v2087_v43  ;;  %v2094_v34 = vadd.f32 %v2093_v41, %v2092_v63 }
 0x266   : > { %2095 = vadd.xlane.f32.xlu1 %v2094_v34 }
 0x2f1   : > { %v2089_v11 = vpop.xlane.xlu0 %2088 }
 0x2f2   : > { %2091 = vst.msk [vmem:[%s241_s21] sm:$0xff] %vm2090_vm9, %v2089_v11 }
 0x2f3   : > { %v2096_v51 = vpop.xlane.xlu1 %2095 }
 0x2f4   : > { %2097 = vst.msk [vmem:[%s245_s24] sm:$0xff] %vm2090_vm9, %v2096_v51 }
 0x2f5 PF: > { %s16_s18 = sadd.s32 1, %s2459_s18  }
 0x2f6   : > { %p13_p4 = scmp.ge.s32.totalorder %s16_s18, 4  }
 0x2f8   :  { %15 = sbr.rel (!%p13_p4) target bundleno = 1 (0x1), region = 86 }

</bundles_post_ra>
